<compile_context>
chip_gen: v7x
topology: tpu7x:2x2x1
jax: 0.10.0
libtpu: 0.0.40
codegen_flags: <defaults>
</compile_context>

<pallas_src>
import jax
import jax.numpy as jnp
from jax import lax
from jax.experimental import pallas as pl
from jax.experimental.pallas import tpu as pltpu

SOS_TOKEN = 1

_VMEM = pl.BlockSpec(memory_space=pltpu.MemorySpace.VMEM)


# ----------------------------------------------------------------------------
# Shared GRU cell math (input projection `gi` precomputed / folded)
# ----------------------------------------------------------------------------
def _gru_from_gi(gi, h, whh_t, b_hh):
    """GRU cell given gi = x @ W_ih^T + b_ih.  PyTorch gate order (r, z, n);
    b_hh_n stays inside the r* term exactly as in torch.nn.GRU."""
    H = h.shape[-1]
    gh = jnp.dot(h, whh_t, preferred_element_type=jnp.float32) + b_hh
    r = jax.nn.sigmoid(gi[:, :H] + gh[:, :H])
    z = jax.nn.sigmoid(gi[:, H:2 * H] + gh[:, H:2 * H])
    n = jnp.tanh(gi[:, 2 * H:] + r * gh[:, 2 * H:])
    return (1.0 - z) * n + z * h


# ----------------------------------------------------------------------------
# Encoder: single kernel invocation, hoisted input projection, in-kernel loop
# ----------------------------------------------------------------------------
def encoder_kernel(x_ref, wih_ref, whh_ref, bih_ref, bhh_ref, hout_ref, gi_scr):
    B, H = hout_ref.shape
    T = x_ref.shape[0] // B

    # Hoisted input projection for ALL timesteps: one (T*B, H) x (H, 3H) matmul
    # (much better MXU fill than per-step (B, H) matmuls on the serial path).
    gi_scr[...] = (jnp.dot(x_ref[...], wih_ref[...],
                           preferred_element_type=jnp.float32) + bih_ref[...])

    whh = whh_ref[...]
    bhh = bhh_ref[...]

    def step(t, h):
        start = pl.multiple_of(t * B, B)          # sublane-aligned slice of gi
        gi = gi_scr[pl.ds(start, B), :]
        return _gru_from_gi(gi, h, whh, bhh)

    h_final = lax.fori_loop(0, T, step, jnp.zeros((B, H), jnp.float32),
                            unroll=True)
    hout_ref[...] = h_final                       # single final store


def run_encoder(x_flat, batch, w_ih_t, w_hh_t, b_ih, b_hh):
    TB, H = x_flat.shape
    return pl.pallas_call(
        encoder_kernel,
        out_shape=jax.ShapeDtypeStruct((batch, H), jnp.float32),
        in_specs=[_VMEM] * 5,
        out_specs=_VMEM,
        scratch_shapes=[pltpu.VMEM((TB, 3 * H), jnp.float32)],
    )(x_flat, w_ih_t, w_hh_t, b_ih, b_hh)


# ----------------------------------------------------------------------------
# Decoder: one kernel for the whole autoregressive loop (grid over T_out)
# ----------------------------------------------------------------------------
def decoder_kernel(tf_ref,                                    # scalar prefetch (SMEM)
                   h0_ref, eih_ref, whh_ref, bih_ref, bhh_ref,
                   wout_ref, bout_ref, tgt_ref,               # inputs
                   logits_ref,                                # output
                   h_scr, oh_scr):                            # VMEM scratch
    t = pl.program_id(0)
    B, V = oh_scr.shape

    col = lax.broadcasted_iota(jnp.int32, (B, V), 1)

    @pl.when(t == 0)
    def _():
        h_scr[...] = h0_ref[...]
        oh_scr[...] = (col == SOS_TOKEN).astype(jnp.float32)  # one-hot(SOS)

    h = h_scr[...]
    onehot = oh_scr[...]

    # Embedding + input projection folded into one matmul: onehot @ (E @ W_ih^T).
    gi = (jnp.dot(onehot, eih_ref[...], preferred_element_type=jnp.float32)
          + bih_ref[...])
    h_new = _gru_from_gi(gi, h, whh_ref[...], bhh_ref[...])
    h_scr[...] = h_new

    # Output projection (lane-dense V).
    # TODO(synk): for realistic vocab sizes tile W_out^T over V with a grid axis
    # (VMEM budget concern on v7x); unnecessary at V=128.
    logits = (jnp.dot(h_new, wout_ref[...], preferred_element_type=jnp.float32)
              + bout_ref[...])
    logits_ref[0] = logits

    # Next decoder input: argmax one-hot (first-max tie-break) or teacher target.
    row_max = jnp.max(logits, axis=1, keepdims=True)
    argmax_idx = jnp.min(jnp.where(logits == row_max, col, V),
                         axis=1, keepdims=True)
    top1_onehot = (col == argmax_idx).astype(jnp.float32)

    tf = tf_ref[t]

    @pl.when(tf != 0)
    def _():
        oh_scr[...] = tgt_ref[0]

    @pl.when(tf == 0)
    def _():
        oh_scr[...] = top1_onehot


def run_decoder(h0, e_ih, w_hh_t, b_ih, b_hh, w_out_t, b_out,
                tgt_onehot, tf_flags_i32):
    T_out, B, V = tgt_onehot.shape
    H = h0.shape[1]
    grid_spec = pltpu.PrefetchScalarGridSpec(
        num_scalar_prefetch=1,
        grid=(T_out,),
        in_specs=[
            pl.BlockSpec((B, H), lambda t, tf: (0, 0)),         # encoder hidden
            pl.BlockSpec((V, 3 * H), lambda t, tf: (0, 0)),     # E @ W_ih^T
            pl.BlockSpec((H, 3 * H), lambda t, tf: (0, 0)),     # W_hh^T
            pl.BlockSpec((1, 3 * H), lambda t, tf: (0, 0)),     # b_ih
            pl.BlockSpec((1, 3 * H), lambda t, tf: (0, 0)),     # b_hh
            pl.BlockSpec((H, V), lambda t, tf: (0, 0)),         # W_out^T
            pl.BlockSpec((1, V), lambda t, tf: (0, 0)),         # b_out
            pl.BlockSpec((1, B, V), lambda t, tf: (t, 0, 0)),   # target one-hot[t]
        ],
        out_specs=pl.BlockSpec((1, B, V), lambda t, tf: (t, 0, 0)),
        scratch_shapes=[pltpu.VMEM((B, H), jnp.float32),        # hidden carry
                        pltpu.VMEM((B, V), jnp.float32)],       # next-input one-hot
    )
    return pl.pallas_call(
        decoder_kernel,
        out_shape=jax.ShapeDtypeStruct((T_out, B, V), jnp.float32),
        grid_spec=grid_spec,
        compiler_params=pltpu.CompilerParams(
            dimension_semantics=("arbitrary",)),                # recurrence is serial
    )(tf_flags_i32, h0, e_ih, w_hh_t, b_ih, b_hh, w_out_t, b_out, tgt_onehot)


# ----------------------------------------------------------------------------
# Forward pass
# ----------------------------------------------------------------------------
@jax.jit
def seq2seq_forward(params, inputs, outputs, tf_flags):
    """inputs: [B, T_in] int32, outputs: [B, T_out] int32, tf_flags: [T_out] bool.
    Returns [B, T_out, V_out] logits (== predicted_outputs.permute(1,0,2))."""
    B, _ = outputs.shape
    H = params["enc_emb"].shape[1]
    V_out = params["dec_emb"].shape[0]
    T_in = inputs.shape[1]

    # Encoder embedding gather (XLA glue), time-major flattened for the kernel.
    enc_emb = jnp.take(params["enc_emb"], inputs, axis=0)            # [B, T_in, H]
    x_flat = jnp.transpose(enc_emb, (1, 0, 2)).reshape(T_in * B, H)  # [T_in*B, H]

    hidden = run_encoder(x_flat, B, params["enc_wih_t"], params["enc_whh_t"],
                         params["enc_bih"], params["enc_bhh"])       # [B, H]

    # Fold the decoder embedding into the input projection (one-time matmul):
    # emb(tok) @ W_ih^T == one_hot(tok) @ (E @ W_ih^T).
    e_ih = jnp.dot(params["dec_emb"], params["dec_wih_t"],
                   preferred_element_type=jnp.float32)               # [V_out, 3H]
    tgt_onehot = jax.nn.one_hot(outputs.T, V_out, dtype=jnp.float32)  # [T_out, B, V]

    logits_tbv = run_decoder(hidden, e_ih, params["dec_whh_t"],
                             params["dec_bih"], params["dec_bhh"],
                             params["dec_wout_t"], params["dec_bout"],
                             tgt_onehot, tf_flags.astype(jnp.int32))
    return jnp.transpose(logits_tbv, (1, 0, 2))                      # [B, T_out, V]


# ----------------------------------------------------------------------------
# Deterministic parameter construction
# ----------------------------------------------------------------------------
def make_params(key, v_in, v_out, hidden):
    ks = jax.random.split(key, 12)
    s = 0.1
    return {
        "enc_emb":    s * jax.random.normal(ks[0], (v_in, hidden), jnp.float32),
        "enc_wih_t":  s * jax.random.normal(ks[1], (hidden, 3 * hidden), jnp.float32),
        "enc_whh_t":  s * jax.random.normal(ks[2], (hidden, 3 * hidden), jnp.float32),
        "enc_bih":    s * jax.random.normal(ks[3], (1, 3 * hidden), jnp.float32),
        "enc_bhh":    s * jax.random.normal(ks[4], (1, 3 * hidden), jnp.float32),
        "dec_emb":    s * jax.random.normal(ks[5], (v_out, hidden), jnp.float32),
        "dec_wih_t":  s * jax.random.normal(ks[6], (hidden, 3 * hidden), jnp.float32),
        "dec_whh_t":  s * jax.random.normal(ks[7], (hidden, 3 * hidden), jnp.float32),
        "dec_bih":    s * jax.random.normal(ks[8], (1, 3 * hidden), jnp.float32),
        "dec_bhh":    s * jax.random.normal(ks[9], (1, 3 * hidden), jnp.float32),
        "dec_wout_t": s * jax.random.normal(ks[10], (hidden, v_out), jnp.float32),
        "dec_bout":   s * jax.random.normal(ks[11], (1, v_out), jnp.float32),
    }


if __name__ == "__main__":
    B, T_IN, T_OUT = 8, 8, 8
    HIDDEN = 128
    V_IN, V_OUT = 96, 128

    key = jax.random.PRNGKey(0)
    k_par, k_in, k_out, k_tf = jax.random.split(key, 4)

    params = make_params(k_par, V_IN, V_OUT, HIDDEN)
    inputs = jax.random.randint(k_in, (B, T_IN), 0, V_IN, dtype=jnp.int32)
    outputs = jax.random.randint(k_out, (B, T_OUT), 0, V_OUT, dtype=jnp.int32)
    # TODO(synk): PyTorch draws random.random() per step for teacher forcing;
    # we use a deterministic per-step Bernoulli(0.5) flag instead.
    tf_flags = jax.random.bernoulli(k_tf, 0.5, (T_OUT,))

    result = seq2seq_forward(params, inputs, outputs, tf_flags)
    result = jax.block_until_ready(result)
    assert result.shape == (B, T_OUT, V_OUT)
    print("KERNEL_OK")
</pallas_src>

<mosaic_0001>
module attributes {stable_mosaic.version = 11 : i64} {
  func.func @encoder_kernel(%arg0: memref<64x128xf32, #tpu.memory_space<vmem>>, %arg1: memref<128x384xf32, #tpu.memory_space<vmem>>, %arg2: memref<128x384xf32, #tpu.memory_space<vmem>>, %arg3: memref<1x384xf32, #tpu.memory_space<vmem>>, %arg4: memref<1x384xf32, #tpu.memory_space<vmem>>, %arg5: memref<8x128xf32, #tpu.memory_space<vmem>>, %arg6: memref<64x384xf32, #tpu.memory_space<vmem>>) attributes {dimension_semantics = [], scalar_prefetch = 0 : i64, scratch_operands = 1 : i64, tpu.core_type = #tpu.core_type<tc>} {
    %c0 = arith.constant 0 : index
    %c0_0 = arith.constant 0 : index
    %0 = vector.load %arg0[%c0, %c0_0] : memref<64x128xf32, #tpu.memory_space<vmem>>, vector<64x128xf32>
    %c0_1 = arith.constant 0 : index
    %c0_2 = arith.constant 0 : index
    %1 = vector.load %arg1[%c0_1, %c0_2] : memref<128x384xf32, #tpu.memory_space<vmem>>, vector<128x384xf32>
    %cst = arith.constant dense<0.000000e+00> : vector<64x384xf32>
    %2 = tpu.matmul %0, %1, %cst {dimension_numbers = #tpu.dot_dimension_numbers<[1], [0], [0], [1], [0, 0, 1, 1], [], []>} : vector<64x128xf32>, vector<128x384xf32>, vector<64x384xf32> -> vector<64x384xf32>
    %c0_3 = arith.constant 0 : index
    %c0_4 = arith.constant 0 : index
    %3 = vector.load %arg3[%c0_3, %c0_4] : memref<1x384xf32, #tpu.memory_space<vmem>>, vector<1x384xf32>
    %4 = vector.broadcast %3 : vector<1x384xf32> to vector<64x384xf32>
    %5 = arith.addf %2, %4 : vector<64x384xf32>
    %c0_5 = arith.constant 0 : index
    %c0_6 = arith.constant 0 : index
    %6 = vector.load %arg6[%c0_5, %c0_6] : memref<64x384xf32, #tpu.memory_space<vmem>>, vector<64x384xf32>
    tpu.vector_store %arg6[%c0_5, %c0_6], %5 {strides = array<i32>} : memref<64x384xf32, #tpu.memory_space<vmem>>, vector<64x384xf32>,
    %c0_7 = arith.constant 0 : index
    %c0_8 = arith.constant 0 : index
    %7 = vector.load %arg2[%c0_7, %c0_8] : memref<128x384xf32, #tpu.memory_space<vmem>>, vector<128x384xf32>
    %c0_9 = arith.constant 0 : index
    %c0_10 = arith.constant 0 : index
    %8 = vector.load %arg4[%c0_9, %c0_10] : memref<1x384xf32, #tpu.memory_space<vmem>>, vector<1x384xf32>
    %cst_11 = arith.constant 0.000000e+00 : f32
    %9 = vector.broadcast %cst_11 : f32 to vector<8x128xf32>
    %c0_i32 = arith.constant 0 : i32
    %c8_i32 = arith.constant 8 : i32
    %10 = arith.muli %c0_i32, %c8_i32 : i32
    %11 = tpu.assume_multiple %10, 8 : i32
    %12 = arith.index_cast %11 : i32 to index
    %c0_12 = arith.constant 0 : index
    %13 = vector.load %arg6[%12, %c0_12] : memref<64x384xf32, #tpu.memory_space<vmem>>, vector<8x384xf32>
    %cst_13 = arith.constant dense<0.000000e+00> : vector<8x384xf32>
    %14 = tpu.matmul %9, %7, %cst_13 {dimension_numbers = #tpu.dot_dimension_numbers<[1], [0], [0], [1], [0, 0, 1, 1], [], []>} : vector<8x128xf32>, vector<128x384xf32>, vector<8x384xf32> -> vector<8x384xf32>
    %15 = vector.broadcast %8 : vector<1x384xf32> to vector<8x384xf32>
    %16 = arith.addf %14, %15 : vector<8x384xf32>
    %17 = vector.extract_strided_slice %13 {offsets = [0, 0], sizes = [8, 128], strides = [1, 1]} : vector<8x384xf32> to vector<8x128xf32>
    %18 = vector.extract_strided_slice %16 {offsets = [0, 0], sizes = [8, 128], strides = [1, 1]} : vector<8x384xf32> to vector<8x128xf32>
    %19 = arith.addf %17, %18 : vector<8x128xf32>
    %20 = arith.negf %19 : vector<8x128xf32>
    %21 = math.exp %20 : vector<8x128xf32>
    %cst_14 = arith.constant 1.000000e+00 : f32
    %22 = vector.broadcast %cst_14 : f32 to vector<8x128xf32>
    %23 = arith.addf %22, %21 : vector<8x128xf32>
    %24 = arith.divf %22, %23 : vector<8x128xf32>
    %25 = vector.extract_strided_slice %13 {offsets = [0, 128], sizes = [8, 128], strides = [1, 1]} : vector<8x384xf32> to vector<8x128xf32>
    %26 = vector.extract_strided_slice %16 {offsets = [0, 128], sizes = [8, 128], strides = [1, 1]} : vector<8x384xf32> to vector<8x128xf32>
    %27 = arith.addf %25, %26 : vector<8x128xf32>
    %28 = arith.negf %27 : vector<8x128xf32>
    %29 = math.exp %28 : vector<8x128xf32>
    %cst_15 = arith.constant 1.000000e+00 : f32
    %30 = vector.broadcast %cst_15 : f32 to vector<8x128xf32>
    %31 = arith.addf %30, %29 : vector<8x128xf32>
    %32 = arith.divf %30, %31 : vector<8x128xf32>
    %33 = vector.extract_strided_slice %13 {offsets = [0, 256], sizes = [8, 128], strides = [1, 1]} : vector<8x384xf32> to vector<8x128xf32>
    %34 = vector.extract_strided_slice %16 {offsets = [0, 256], sizes = [8, 128], strides = [1, 1]} : vector<8x384xf32> to vector<8x128xf32>
    %35 = arith.mulf %24, %34 : vector<8x128xf32>
    %36 = arith.addf %33, %35 : vector<8x128xf32>
    %37 = math.tanh %36 : vector<8x128xf32>
    %cst_16 = arith.constant 1.000000e+00 : f32
    %38 = vector.broadcast %cst_16 : f32 to vector<8x128xf32>
    %39 = arith.subf %38, %32 : vector<8x128xf32>
    %40 = arith.mulf %39, %37 : vector<8x128xf32>
    %41 = arith.mulf %32, %9 : vector<8x128xf32>
    %42 = arith.addf %40, %41 : vector<8x128xf32>
    %c1_i32 = arith.constant 1 : i32
    %c8_i32_17 = arith.constant 8 : i32
    %43 = arith.muli %c1_i32, %c8_i32_17 : i32
    %44 = tpu.assume_multiple %43, 8 : i32
    %45 = arith.index_cast %44 : i32 to index
    %c0_18 = arith.constant 0 : index
    %46 = vector.load %arg6[%45, %c0_18] : memref<64x384xf32, #tpu.memory_space<vmem>>, vector<8x384xf32>
    %cst_19 = arith.constant dense<0.000000e+00> : vector<8x384xf32>
    %47 = tpu.matmul %42, %7, %cst_19 {dimension_numbers = #tpu.dot_dimension_numbers<[1], [0], [0], [1], [0, 0, 1, 1], [], []>} : vector<8x128xf32>, vector<128x384xf32>, vector<8x384xf32> -> vector<8x384xf32>
    %48 = vector.broadcast %8 : vector<1x384xf32> to vector<8x384xf32>
    %49 = arith.addf %47, %48 : vector<8x384xf32>
    %50 = vector.extract_strided_slice %46 {offsets = [0, 0], sizes = [8, 128], strides = [1, 1]} : vector<8x384xf32> to vector<8x128xf32>
    %51 = vector.extract_strided_slice %49 {offsets = [0, 0], sizes = [8, 128], strides = [1, 1]} : vector<8x384xf32> to vector<8x128xf32>
    %52 = arith.addf %50, %51 : vector<8x128xf32>
    %53 = arith.negf %52 : vector<8x128xf32>
    %54 = math.exp %53 : vector<8x128xf32>
    %cst_20 = arith.constant 1.000000e+00 : f32
    %55 = vector.broadcast %cst_20 : f32 to vector<8x128xf32>
    %56 = arith.addf %55, %54 : vector<8x128xf32>
    %57 = arith.divf %55, %56 : vector<8x128xf32>
    %58 = vector.extract_strided_slice %46 {offsets = [0, 128], sizes = [8, 128], strides = [1, 1]} : vector<8x384xf32> to vector<8x128xf32>
    %59 = vector.extract_strided_slice %49 {offsets = [0, 128], sizes = [8, 128], strides = [1, 1]} : vector<8x384xf32> to vector<8x128xf32>
    %60 = arith.addf %58, %59 : vector<8x128xf32>
    %61 = arith.negf %60 : vector<8x128xf32>
    %62 = math.exp %61 : vector<8x128xf32>
    %cst_21 = arith.constant 1.000000e+00 : f32
    %63 = vector.broadcast %cst_21 : f32 to vector<8x128xf32>
    %64 = arith.addf %63, %62 : vector<8x128xf32>
    %65 = arith.divf %63, %64 : vector<8x128xf32>
    %66 = vector.extract_strided_slice %46 {offsets = [0, 256], sizes = [8, 128], strides = [1, 1]} : vector<8x384xf32> to vector<8x128xf32>
    %67 = vector.extract_strided_slice %49 {offsets = [0, 256], sizes = [8, 128], strides = [1, 1]} : vector<8x384xf32> to vector<8x128xf32>
    %68 = arith.mulf %57, %67 : vector<8x128xf32>
    %69 = arith.addf %66, %68 : vector<8x128xf32>
    %70 = math.tanh %69 : vector<8x128xf32>
    %cst_22 = arith.constant 1.000000e+00 : f32
    %71 = vector.broadcast %cst_22 : f32 to vector<8x128xf32>
    %72 = arith.subf %71, %65 : vector<8x128xf32>
    %73 = arith.mulf %72, %70 : vector<8x128xf32>
    %74 = arith.mulf %65, %42 : vector<8x128xf32>
    %75 = arith.addf %73, %74 : vector<8x128xf32>
    %c2_i32 = arith.constant 2 : i32
    %c8_i32_23 = arith.constant 8 : i32
    %76 = arith.muli %c2_i32, %c8_i32_23 : i32
    %77 = tpu.assume_multiple %76, 8 : i32
    %78 = arith.index_cast %77 : i32 to index
    %c0_24 = arith.constant 0 : index
    %79 = vector.load %arg6[%78, %c0_24] : memref<64x384xf32, #tpu.memory_space<vmem>>, vector<8x384xf32>
    %cst_25 = arith.constant dense<0.000000e+00> : vector<8x384xf32>
    %80 = tpu.matmul %75, %7, %cst_25 {dimension_numbers = #tpu.dot_dimension_numbers<[1], [0], [0], [1], [0, 0, 1, 1], [], []>} : vector<8x128xf32>, vector<128x384xf32>, vector<8x384xf32> -> vector<8x384xf32>
    %81 = vector.broadcast %8 : vector<1x384xf32> to vector<8x384xf32>
    %82 = arith.addf %80, %81 : vector<8x384xf32>
    %83 = vector.extract_strided_slice %79 {offsets = [0, 0], sizes = [8, 128], strides = [1, 1]} : vector<8x384xf32> to vector<8x128xf32>
    %84 = vector.extract_strided_slice %82 {offsets = [0, 0], sizes = [8, 128], strides = [1, 1]} : vector<8x384xf32> to vector<8x128xf32>
    %85 = arith.addf %83, %84 : vector<8x128xf32>
    %86 = arith.negf %85 : vector<8x128xf32>
    %87 = math.exp %86 : vector<8x128xf32>
    %cst_26 = arith.constant 1.000000e+00 : f32
    %88 = vector.broadcast %cst_26 : f32 to vector<8x128xf32>
    %89 = arith.addf %88, %87 : vector<8x128xf32>
    %90 = arith.divf %88, %89 : vector<8x128xf32>
    %91 = vector.extract_strided_slice %79 {offsets = [0, 128], sizes = [8, 128], strides = [1, 1]} : vector<8x384xf32> to vector<8x128xf32>
    %92 = vector.extract_strided_slice %82 {offsets = [0, 128], sizes = [8, 128], strides = [1, 1]} : vector<8x384xf32> to vector<8x128xf32>
    %93 = arith.addf %91, %92 : vector<8x128xf32>
    %94 = arith.negf %93 : vector<8x128xf32>
    %95 = math.exp %94 : vector<8x128xf32>
    %cst_27 = arith.constant 1.000000e+00 : f32
    %96 = vector.broadcast %cst_27 : f32 to vector<8x128xf32>
    %97 = arith.addf %96, %95 : vector<8x128xf32>
    %98 = arith.divf %96, %97 : vector<8x128xf32>
    %99 = vector.extract_strided_slice %79 {offsets = [0, 256], sizes = [8, 128], strides = [1, 1]} : vector<8x384xf32> to vector<8x128xf32>
    %100 = vector.extract_strided_slice %82 {offsets = [0, 256], sizes = [8, 128], strides = [1, 1]} : vector<8x384xf32> to vector<8x128xf32>
    %101 = arith.mulf %90, %100 : vector<8x128xf32>
    %102 = arith.addf %99, %101 : vector<8x128xf32>
    %103 = math.tanh %102 : vector<8x128xf32>
    %cst_28 = arith.constant 1.000000e+00 : f32
    %104 = vector.broadcast %cst_28 : f32 to vector<8x128xf32>
    %105 = arith.subf %104, %98 : vector<8x128xf32>
    %106 = arith.mulf %105, %103 : vector<8x128xf32>
    %107 = arith.mulf %98, %75 : vector<8x128xf32>
    %108 = arith.addf %106, %107 : vector<8x128xf32>
    %c3_i32 = arith.constant 3 : i32
    %c8_i32_29 = arith.constant 8 : i32
    %109 = arith.muli %c3_i32, %c8_i32_29 : i32
    %110 = tpu.assume_multiple %109, 8 : i32
    %111 = arith.index_cast %110 : i32 to index
    %c0_30 = arith.constant 0 : index
    %112 = vector.load %arg6[%111, %c0_30] : memref<64x384xf32, #tpu.memory_space<vmem>>, vector<8x384xf32>
    %cst_31 = arith.constant dense<0.000000e+00> : vector<8x384xf32>
    %113 = tpu.matmul %108, %7, %cst_31 {dimension_numbers = #tpu.dot_dimension_numbers<[1], [0], [0], [1], [0, 0, 1, 1], [], []>} : vector<8x128xf32>, vector<128x384xf32>, vector<8x384xf32> -> vector<8x384xf32>
    %114 = vector.broadcast %8 : vector<1x384xf32> to vector<8x384xf32>
    %115 = arith.addf %113, %114 : vector<8x384xf32>
    %116 = vector.extract_strided_slice %112 {offsets = [0, 0], sizes = [8, 128], strides = [1, 1]} : vector<8x384xf32> to vector<8x128xf32>
    %117 = vector.extract_strided_slice %115 {offsets = [0, 0], sizes = [8, 128], strides = [1, 1]} : vector<8x384xf32> to vector<8x128xf32>
    %118 = arith.addf %116, %117 : vector<8x128xf32>
    %119 = arith.negf %118 : vector<8x128xf32>
    %120 = math.exp %119 : vector<8x128xf32>
    %cst_32 = arith.constant 1.000000e+00 : f32
    %121 = vector.broadcast %cst_32 : f32 to vector<8x128xf32>
    %122 = arith.addf %121, %120 : vector<8x128xf32>
    %123 = arith.divf %121, %122 : vector<8x128xf32>
    %124 = vector.extract_strided_slice %112 {offsets = [0, 128], sizes = [8, 128], strides = [1, 1]} : vector<8x384xf32> to vector<8x128xf32>
    %125 = vector.extract_strided_slice %115 {offsets = [0, 128], sizes = [8, 128], strides = [1, 1]} : vector<8x384xf32> to vector<8x128xf32>
    %126 = arith.addf %124, %125 : vector<8x128xf32>
    %127 = arith.negf %126 : vector<8x128xf32>
    %128 = math.exp %127 : vector<8x128xf32>
    %cst_33 = arith.constant 1.000000e+00 : f32
    %129 = vector.broadcast %cst_33 : f32 to vector<8x128xf32>
    %130 = arith.addf %129, %128 : vector<8x128xf32>
    %131 = arith.divf %129, %130 : vector<8x128xf32>
    %132 = vector.extract_strided_slice %112 {offsets = [0, 256], sizes = [8, 128], strides = [1, 1]} : vector<8x384xf32> to vector<8x128xf32>
    %133 = vector.extract_strided_slice %115 {offsets = [0, 256], sizes = [8, 128], strides = [1, 1]} : vector<8x384xf32> to vector<8x128xf32>
    %134 = arith.mulf %123, %133 : vector<8x128xf32>
    %135 = arith.addf %132, %134 : vector<8x128xf32>
    %136 = math.tanh %135 : vector<8x128xf32>
    %cst_34 = arith.constant 1.000000e+00 : f32
    %137 = vector.broadcast %cst_34 : f32 to vector<8x128xf32>
    %138 = arith.subf %137, %131 : vector<8x128xf32>
    %139 = arith.mulf %138, %136 : vector<8x128xf32>
    %140 = arith.mulf %131, %108 : vector<8x128xf32>
    %141 = arith.addf %139, %140 : vector<8x128xf32>
    %c4_i32 = arith.constant 4 : i32
    %c8_i32_35 = arith.constant 8 : i32
    %142 = arith.muli %c4_i32, %c8_i32_35 : i32
    %143 = tpu.assume_multiple %142, 8 : i32
    %144 = arith.index_cast %143 : i32 to index
    %c0_36 = arith.constant 0 : index
    %145 = vector.load %arg6[%144, %c0_36] : memref<64x384xf32, #tpu.memory_space<vmem>>, vector<8x384xf32>
    %cst_37 = arith.constant dense<0.000000e+00> : vector<8x384xf32>
    %146 = tpu.matmul %141, %7, %cst_37 {dimension_numbers = #tpu.dot_dimension_numbers<[1], [0], [0], [1], [0, 0, 1, 1], [], []>} : vector<8x128xf32>, vector<128x384xf32>, vector<8x384xf32> -> vector<8x384xf32>
    %147 = vector.broadcast %8 : vector<1x384xf32> to vector<8x384xf32>
    %148 = arith.addf %146, %147 : vector<8x384xf32>
    %149 = vector.extract_strided_slice %145 {offsets = [0, 0], sizes = [8, 128], strides = [1, 1]} : vector<8x384xf32> to vector<8x128xf32>
    %150 = vector.extract_strided_slice %148 {offsets = [0, 0], sizes = [8, 128], strides = [1, 1]} : vector<8x384xf32> to vector<8x128xf32>
    %151 = arith.addf %149, %150 : vector<8x128xf32>
    %152 = arith.negf %151 : vector<8x128xf32>
    %153 = math.exp %152 : vector<8x128xf32>
    %cst_38 = arith.constant 1.000000e+00 : f32
    %154 = vector.broadcast %cst_38 : f32 to vector<8x128xf32>
    %155 = arith.addf %154, %153 : vector<8x128xf32>
    %156 = arith.divf %154, %155 : vector<8x128xf32>
    %157 = vector.extract_strided_slice %145 {offsets = [0, 128], sizes = [8, 128], strides = [1, 1]} : vector<8x384xf32> to vector<8x128xf32>
    %158 = vector.extract_strided_slice %148 {offsets = [0, 128], sizes = [8, 128], strides = [1, 1]} : vector<8x384xf32> to vector<8x128xf32>
    %159 = arith.addf %157, %158 : vector<8x128xf32>
    %160 = arith.negf %159 : vector<8x128xf32>
    %161 = math.exp %160 : vector<8x128xf32>
    %cst_39 = arith.constant 1.000000e+00 : f32
    %162 = vector.broadcast %cst_39 : f32 to vector<8x128xf32>
    %163 = arith.addf %162, %161 : vector<8x128xf32>
    %164 = arith.divf %162, %163 : vector<8x128xf32>
    %165 = vector.extract_strided_slice %145 {offsets = [0, 256], sizes = [8, 128], strides = [1, 1]} : vector<8x384xf32> to vector<8x128xf32>
    %166 = vector.extract_strided_slice %148 {offsets = [0, 256], sizes = [8, 128], strides = [1, 1]} : vector<8x384xf32> to vector<8x128xf32>
    %167 = arith.mulf %156, %166 : vector<8x128xf32>
    %168 = arith.addf %165, %167 : vector<8x128xf32>
    %169 = math.tanh %168 : vector<8x128xf32>
    %cst_40 = arith.constant 1.000000e+00 : f32
    %170 = vector.broadcast %cst_40 : f32 to vector<8x128xf32>
    %171 = arith.subf %170, %164 : vector<8x128xf32>
    %172 = arith.mulf %171, %169 : vector<8x128xf32>
    %173 = arith.mulf %164, %141 : vector<8x128xf32>
    %174 = arith.addf %172, %173 : vector<8x128xf32>
    %c5_i32 = arith.constant 5 : i32
    %c8_i32_41 = arith.constant 8 : i32
    %175 = arith.muli %c5_i32, %c8_i32_41 : i32
    %176 = tpu.assume_multiple %175, 8 : i32
    %177 = arith.index_cast %176 : i32 to index
    %c0_42 = arith.constant 0 : index
    %178 = vector.load %arg6[%177, %c0_42] : memref<64x384xf32, #tpu.memory_space<vmem>>, vector<8x384xf32>
    %cst_43 = arith.constant dense<0.000000e+00> : vector<8x384xf32>
    %179 = tpu.matmul %174, %7, %cst_43 {dimension_numbers = #tpu.dot_dimension_numbers<[1], [0], [0], [1], [0, 0, 1, 1], [], []>} : vector<8x128xf32>, vector<128x384xf32>, vector<8x384xf32> -> vector<8x384xf32>
    %180 = vector.broadcast %8 : vector<1x384xf32> to vector<8x384xf32>
    %181 = arith.addf %179, %180 : vector<8x384xf32>
    %182 = vector.extract_strided_slice %178 {offsets = [0, 0], sizes = [8, 128], strides = [1, 1]} : vector<8x384xf32> to vector<8x128xf32>
    %183 = vector.extract_strided_slice %181 {offsets = [0, 0], sizes = [8, 128], strides = [1, 1]} : vector<8x384xf32> to vector<8x128xf32>
    %184 = arith.addf %182, %183 : vector<8x128xf32>
    %185 = arith.negf %184 : vector<8x128xf32>
    %186 = math.exp %185 : vector<8x128xf32>
    %cst_44 = arith.constant 1.000000e+00 : f32
    %187 = vector.broadcast %cst_44 : f32 to vector<8x128xf32>
    %188 = arith.addf %187, %186 : vector<8x128xf32>
    %189 = arith.divf %187, %188 : vector<8x128xf32>
    %190 = vector.extract_strided_slice %178 {offsets = [0, 128], sizes = [8, 128], strides = [1, 1]} : vector<8x384xf32> to vector<8x128xf32>
    %191 = vector.extract_strided_slice %181 {offsets = [0, 128], sizes = [8, 128], strides = [1, 1]} : vector<8x384xf32> to vector<8x128xf32>
    %192 = arith.addf %190, %191 : vector<8x128xf32>
    %193 = arith.negf %192 : vector<8x128xf32>
    %194 = math.exp %193 : vector<8x128xf32>
    %cst_45 = arith.constant 1.000000e+00 : f32
    %195 = vector.broadcast %cst_45 : f32 to vector<8x128xf32>
    %196 = arith.addf %195, %194 : vector<8x128xf32>
    %197 = arith.divf %195, %196 : vector<8x128xf32>
    %198 = vector.extract_strided_slice %178 {offsets = [0, 256], sizes = [8, 128], strides = [1, 1]} : vector<8x384xf32> to vector<8x128xf32>
    %199 = vector.extract_strided_slice %181 {offsets = [0, 256], sizes = [8, 128], strides = [1, 1]} : vector<8x384xf32> to vector<8x128xf32>
    %200 = arith.mulf %189, %199 : vector<8x128xf32>
    %201 = arith.addf %198, %200 : vector<8x128xf32>
    %202 = math.tanh %201 : vector<8x128xf32>
    %cst_46 = arith.constant 1.000000e+00 : f32
    %203 = vector.broadcast %cst_46 : f32 to vector<8x128xf32>
    %204 = arith.subf %203, %197 : vector<8x128xf32>
    %205 = arith.mulf %204, %202 : vector<8x128xf32>
    %206 = arith.mulf %197, %174 : vector<8x128xf32>
    %207 = arith.addf %205, %206 : vector<8x128xf32>
    %c6_i32 = arith.constant 6 : i32
    %c8_i32_47 = arith.constant 8 : i32
    %208 = arith.muli %c6_i32, %c8_i32_47 : i32
    %209 = tpu.assume_multiple %208, 8 : i32
    %210 = arith.index_cast %209 : i32 to index
    %c0_48 = arith.constant 0 : index
    %211 = vector.load %arg6[%210, %c0_48] : memref<64x384xf32, #tpu.memory_space<vmem>>, vector<8x384xf32>
    %cst_49 = arith.constant dense<0.000000e+00> : vector<8x384xf32>
    %212 = tpu.matmul %207, %7, %cst_49 {dimension_numbers = #tpu.dot_dimension_numbers<[1], [0], [0], [1], [0, 0, 1, 1], [], []>} : vector<8x128xf32>, vector<128x384xf32>, vector<8x384xf32> -> vector<8x384xf32>
    %213 = vector.broadcast %8 : vector<1x384xf32> to vector<8x384xf32>
    %214 = arith.addf %212, %213 : vector<8x384xf32>
    %215 = vector.extract_strided_slice %211 {offsets = [0, 0], sizes = [8, 128], strides = [1, 1]} : vector<8x384xf32> to vector<8x128xf32>
    %216 = vector.extract_strided_slice %214 {offsets = [0, 0], sizes = [8, 128], strides = [1, 1]} : vector<8x384xf32> to vector<8x128xf32>
    %217 = arith.addf %215, %216 : vector<8x128xf32>
    %218 = arith.negf %217 : vector<8x128xf32>
    %219 = math.exp %218 : vector<8x128xf32>
    %cst_50 = arith.constant 1.000000e+00 : f32
    %220 = vector.broadcast %cst_50 : f32 to vector<8x128xf32>
    %221 = arith.addf %220, %219 : vector<8x128xf32>
    %222 = arith.divf %220, %221 : vector<8x128xf32>
    %223 = vector.extract_strided_slice %211 {offsets = [0, 128], sizes = [8, 128], strides = [1, 1]} : vector<8x384xf32> to vector<8x128xf32>
    %224 = vector.extract_strided_slice %214 {offsets = [0, 128], sizes = [8, 128], strides = [1, 1]} : vector<8x384xf32> to vector<8x128xf32>
    %225 = arith.addf %223, %224 : vector<8x128xf32>
    %226 = arith.negf %225 : vector<8x128xf32>
    %227 = math.exp %226 : vector<8x128xf32>
    %cst_51 = arith.constant 1.000000e+00 : f32
    %228 = vector.broadcast %cst_51 : f32 to vector<8x128xf32>
    %229 = arith.addf %228, %227 : vector<8x128xf32>
    %230 = arith.divf %228, %229 : vector<8x128xf32>
    %231 = vector.extract_strided_slice %211 {offsets = [0, 256], sizes = [8, 128], strides = [1, 1]} : vector<8x384xf32> to vector<8x128xf32>
    %232 = vector.extract_strided_slice %214 {offsets = [0, 256], sizes = [8, 128], strides = [1, 1]} : vector<8x384xf32> to vector<8x128xf32>
    %233 = arith.mulf %222, %232 : vector<8x128xf32>
    %234 = arith.addf %231, %233 : vector<8x128xf32>
    %235 = math.tanh %234 : vector<8x128xf32>
    %cst_52 = arith.constant 1.000000e+00 : f32
    %236 = vector.broadcast %cst_52 : f32 to vector<8x128xf32>
    %237 = arith.subf %236, %230 : vector<8x128xf32>
    %238 = arith.mulf %237, %235 : vector<8x128xf32>
    %239 = arith.mulf %230, %207 : vector<8x128xf32>
    %240 = arith.addf %238, %239 : vector<8x128xf32>
    %c7_i32 = arith.constant 7 : i32
    %c8_i32_53 = arith.constant 8 : i32
    %241 = arith.muli %c7_i32, %c8_i32_53 : i32
    %242 = tpu.assume_multiple %241, 8 : i32
    %243 = arith.index_cast %242 : i32 to index
    %c0_54 = arith.constant 0 : index
    %244 = vector.load %arg6[%243, %c0_54] : memref<64x384xf32, #tpu.memory_space<vmem>>, vector<8x384xf32>
    %cst_55 = arith.constant dense<0.000000e+00> : vector<8x384xf32>
    %245 = tpu.matmul %240, %7, %cst_55 {dimension_numbers = #tpu.dot_dimension_numbers<[1], [0], [0], [1], [0, 0, 1, 1], [], []>} : vector<8x128xf32>, vector<128x384xf32>, vector<8x384xf32> -> vector<8x384xf32>
    %246 = vector.broadcast %8 : vector<1x384xf32> to vector<8x384xf32>
    %247 = arith.addf %245, %246 : vector<8x384xf32>
    %248 = vector.extract_strided_slice %244 {offsets = [0, 0], sizes = [8, 128], strides = [1, 1]} : vector<8x384xf32> to vector<8x128xf32>
    %249 = vector.extract_strided_slice %247 {offsets = [0, 0], sizes = [8, 128], strides = [1, 1]} : vector<8x384xf32> to vector<8x128xf32>
    %250 = arith.addf %248, %249 : vector<8x128xf32>
    %251 = arith.negf %250 : vector<8x128xf32>
    %252 = math.exp %251 : vector<8x128xf32>
    %cst_56 = arith.constant 1.000000e+00 : f32
    %253 = vector.broadcast %cst_56 : f32 to vector<8x128xf32>
    %254 = arith.addf %253, %252 : vector<8x128xf32>
    %255 = arith.divf %253, %254 : vector<8x128xf32>
    %256 = vector.extract_strided_slice %244 {offsets = [0, 128], sizes = [8, 128], strides = [1, 1]} : vector<8x384xf32> to vector<8x128xf32>
    %257 = vector.extract_strided_slice %247 {offsets = [0, 128], sizes = [8, 128], strides = [1, 1]} : vector<8x384xf32> to vector<8x128xf32>
    %258 = arith.addf %256, %257 : vector<8x128xf32>
    %259 = arith.negf %258 : vector<8x128xf32>
    %260 = math.exp %259 : vector<8x128xf32>
    %cst_57 = arith.constant 1.000000e+00 : f32
    %261 = vector.broadcast %cst_57 : f32 to vector<8x128xf32>
    %262 = arith.addf %261, %260 : vector<8x128xf32>
    %263 = arith.divf %261, %262 : vector<8x128xf32>
    %264 = vector.extract_strided_slice %244 {offsets = [0, 256], sizes = [8, 128], strides = [1, 1]} : vector<8x384xf32> to vector<8x128xf32>
    %265 = vector.extract_strided_slice %247 {offsets = [0, 256], sizes = [8, 128], strides = [1, 1]} : vector<8x384xf32> to vector<8x128xf32>
    %266 = arith.mulf %255, %265 : vector<8x128xf32>
    %267 = arith.addf %264, %266 : vector<8x128xf32>
    %268 = math.tanh %267 : vector<8x128xf32>
    %cst_58 = arith.constant 1.000000e+00 : f32
    %269 = vector.broadcast %cst_58 : f32 to vector<8x128xf32>
    %270 = arith.subf %269, %263 : vector<8x128xf32>
    %271 = arith.mulf %270, %268 : vector<8x128xf32>
    %272 = arith.mulf %263, %240 : vector<8x128xf32>
    %273 = arith.addf %271, %272 : vector<8x128xf32>
    %c8_i32_59 = arith.constant 8 : i32
    %c0_60 = arith.constant 0 : index
    %c0_61 = arith.constant 0 : index
    %274 = vector.load %arg5[%c0_60, %c0_61] : memref<8x128xf32, #tpu.memory_space<vmem>>, vector<8x128xf32>
    tpu.vector_store %arg5[%c0_60, %c0_61], %273 {strides = array<i32>} : memref<8x128xf32, #tpu.memory_space<vmem>>, vector<8x128xf32>,
    return
  }
}

module attributes {stable_mosaic.version = 11 : i64} {
  func.func @decoder_kernel(%arg0: i32, %arg1: memref<8xi32, #tpu.memory_space<smem>>, %arg2: memref<8x128xf32, #tpu.memory_space<vmem>>, %arg3: memref<128x384xf32, #tpu.memory_space<vmem>>, %arg4: memref<128x384xf32, #tpu.memory_space<vmem>>, %arg5: memref<1x384xf32, #tpu.memory_space<vmem>>, %arg6: memref<1x384xf32, #tpu.memory_space<vmem>>, %arg7: memref<128x128xf32, #tpu.memory_space<vmem>>, %arg8: memref<1x128xf32, #tpu.memory_space<vmem>>, %arg9: memref<1x8x128xf32, #tpu.memory_space<vmem>>, %arg10: memref<1x8x128xf32, #tpu.memory_space<vmem>>, %arg11: memref<8x128xf32, #tpu.memory_space<vmem>>, %arg12: memref<8x128xf32, #tpu.memory_space<vmem>>) attributes {dimension_semantics = [#tpu.dimension_semantics<arbitrary>], iteration_bounds = array<i64: 8>, scalar_prefetch = 1 : i64, scratch_operands = 2 : i64, tpu.core_type = #tpu.core_type<tc>, window_params = [{pipeline_mode = #tpu.pipeline_mode<synchronous>, transform_indices = @transform_0, window_bounds = array<i64: 8, 128>}, {pipeline_mode = #tpu.pipeline_mode<synchronous>, transform_indices = @transform_1, window_bounds = array<i64: 128, 384>}, {pipeline_mode = #tpu.pipeline_mode<synchronous>, transform_indices = @transform_2, window_bounds = array<i64: 128, 384>}, {pipeline_mode = #tpu.pipeline_mode<synchronous>, transform_indices = @transform_3, window_bounds = array<i64: 1, 384>}, {pipeline_mode = #tpu.pipeline_mode<synchronous>, transform_indices = @transform_4, window_bounds = array<i64: 1, 384>}, {pipeline_mode = #tpu.pipeline_mode<synchronous>, transform_indices = @transform_5, window_bounds = array<i64: 128, 128>}, {pipeline_mode = #tpu.pipeline_mode<synchronous>, transform_indices = @transform_6, window_bounds = array<i64: 1, 128>}, {transform_indices = @transform_7, window_bounds = array<i64: 1, 8, 128>}, {transform_indices = @transform_8, window_bounds = array<i64: 1, 8, 128>}]} {
    %0 = tpu.iota {dimensions = array<i32: 1>} : vector<8x128xi32>
    %c0_i32 = arith.constant 0 : i32
    %1 = arith.cmpi eq, %arg0, %c0_i32 : i32
    %2 = arith.extui %1 : i1 to i32
    %c0_i32_0 = arith.constant 0 : i32
    %3 = arith.cmpi ne, %2, %c0_i32_0 : i32
    scf.if %3 {
      %c0_32 = arith.constant 0 : index
      %c0_33 = arith.constant 0 : index
      %71 = vector.load %arg2[%c0_32, %c0_33] : memref<8x128xf32, #tpu.memory_space<vmem>>, vector<8x128xf32>
      %c0_34 = arith.constant 0 : index
      %c0_35 = arith.constant 0 : index
      %72 = vector.load %arg11[%c0_34, %c0_35] : memref<8x128xf32, #tpu.memory_space<vmem>>, vector<8x128xf32>
      tpu.vector_store %arg11[%c0_34, %c0_35], %71 {strides = array<i32>} : memref<8x128xf32, #tpu.memory_space<vmem>>, vector<8x128xf32>,
      %c1_i32 = arith.constant 1 : i32
      %73 = vector.broadcast %c1_i32 : i32 to vector<8x128xi32>
      %74 = arith.cmpi eq, %0, %73 : vector<8x128xi32>
      %75 = arith.extui %74 : vector<8x128xi1> to vector<8x128xi32>
      %76 = arith.sitofp %75 : vector<8x128xi32> to vector<8x128xf32>
      %c0_36 = arith.constant 0 : index
      %c0_37 = arith.constant 0 : index
      %77 = vector.load %arg12[%c0_36, %c0_37] : memref<8x128xf32, #tpu.memory_space<vmem>>, vector<8x128xf32>
      tpu.vector_store %arg12[%c0_36, %c0_37], %76 {strides = array<i32>} : memref<8x128xf32, #tpu.memory_space<vmem>>, vector<8x128xf32>,
    } else {
    }
    %c0 = arith.constant 0 : index
    %c0_1 = arith.constant 0 : index
    %4 = vector.load %arg11[%c0, %c0_1] : memref<8x128xf32, #tpu.memory_space<vmem>>, vector<8x128xf32>
    %c0_2 = arith.constant 0 : index
    %c0_3 = arith.constant 0 : index
    %5 = vector.load %arg12[%c0_2, %c0_3] : memref<8x128xf32, #tpu.memory_space<vmem>>, vector<8x128xf32>
    %c0_4 = arith.constant 0 : index
    %c0_5 = arith.constant 0 : index
    %6 = vector.load %arg3[%c0_4, %c0_5] : memref<128x384xf32, #tpu.memory_space<vmem>>, vector<128x384xf32>
    %cst = arith.constant dense<0.000000e+00> : vector<8x384xf32>
    %7 = tpu.matmul %5, %6, %cst {dimension_numbers = #tpu.dot_dimension_numbers<[1], [0], [0], [1], [0, 0, 1, 1], [], []>} : vector<8x128xf32>, vector<128x384xf32>, vector<8x384xf32> -> vector<8x384xf32>
    %c0_6 = arith.constant 0 : index
    %c0_7 = arith.constant 0 : index
    %8 = vector.load %arg5[%c0_6, %c0_7] : memref<1x384xf32, #tpu.memory_space<vmem>>, vector<1x384xf32>
    %9 = vector.broadcast %8 : vector<1x384xf32> to vector<8x384xf32>
    %10 = arith.addf %7, %9 : vector<8x384xf32>
    %c0_8 = arith.constant 0 : index
    %c0_9 = arith.constant 0 : index
    %11 = vector.load %arg4[%c0_8, %c0_9] : memref<128x384xf32, #tpu.memory_space<vmem>>, vector<128x384xf32>
    %c0_10 = arith.constant 0 : index
    %c0_11 = arith.constant 0 : index
    %12 = vector.load %arg6[%c0_10, %c0_11] : memref<1x384xf32, #tpu.memory_space<vmem>>, vector<1x384xf32>
    %cst_12 = arith.constant dense<0.000000e+00> : vector<8x384xf32>
    %13 = tpu.matmul %4, %11, %cst_12 {dimension_numbers = #tpu.dot_dimension_numbers<[1], [0], [0], [1], [0, 0, 1, 1], [], []>} : vector<8x128xf32>, vector<128x384xf32>, vector<8x384xf32> -> vector<8x384xf32>
    %14 = vector.broadcast %12 : vector<1x384xf32> to vector<8x384xf32>
    %15 = arith.addf %13, %14 : vector<8x384xf32>
    %16 = vector.extract_strided_slice %10 {offsets = [0, 0], sizes = [8, 128], strides = [1, 1]} : vector<8x384xf32> to vector<8x128xf32>
    %17 = vector.extract_strided_slice %15 {offsets = [0, 0], sizes = [8, 128], strides = [1, 1]} : vector<8x384xf32> to vector<8x128xf32>
    %18 = arith.addf %16, %17 : vector<8x128xf32>
    %19 = arith.negf %18 : vector<8x128xf32>
    %20 = math.exp %19 : vector<8x128xf32>
    %cst_13 = arith.constant 1.000000e+00 : f32
    %21 = vector.broadcast %cst_13 : f32 to vector<8x128xf32>
    %22 = arith.addf %21, %20 : vector<8x128xf32>
    %23 = arith.divf %21, %22 : vector<8x128xf32>
    %24 = vector.extract_strided_slice %10 {offsets = [0, 128], sizes = [8, 128], strides = [1, 1]} : vector<8x384xf32> to vector<8x128xf32>
    %25 = vector.extract_strided_slice %15 {offsets = [0, 128], sizes = [8, 128], strides = [1, 1]} : vector<8x384xf32> to vector<8x128xf32>
    %26 = arith.addf %24, %25 : vector<8x128xf32>
    %27 = arith.negf %26 : vector<8x128xf32>
    %28 = math.exp %27 : vector<8x128xf32>
    %cst_14 = arith.constant 1.000000e+00 : f32
    %29 = vector.broadcast %cst_14 : f32 to vector<8x128xf32>
    %30 = arith.addf %29, %28 : vector<8x128xf32>
    %31 = arith.divf %29, %30 : vector<8x128xf32>
    %32 = vector.extract_strided_slice %10 {offsets = [0, 256], sizes = [8, 128], strides = [1, 1]} : vector<8x384xf32> to vector<8x128xf32>
    %33 = vector.extract_strided_slice %15 {offsets = [0, 256], sizes = [8, 128], strides = [1, 1]} : vector<8x384xf32> to vector<8x128xf32>
    %34 = arith.mulf %23, %33 : vector<8x128xf32>
    %35 = arith.addf %32, %34 : vector<8x128xf32>
    %36 = math.tanh %35 : vector<8x128xf32>
    %cst_15 = arith.constant 1.000000e+00 : f32
    %37 = vector.broadcast %cst_15 : f32 to vector<8x128xf32>
    %38 = arith.subf %37, %31 : vector<8x128xf32>
    %39 = arith.mulf %38, %36 : vector<8x128xf32>
    %40 = arith.mulf %31, %4 : vector<8x128xf32>
    %41 = arith.addf %39, %40 : vector<8x128xf32>
    %c0_16 = arith.constant 0 : index
    %c0_17 = arith.constant 0 : index
    %42 = vector.load %arg11[%c0_16, %c0_17] : memref<8x128xf32, #tpu.memory_space<vmem>>, vector<8x128xf32>
    tpu.vector_store %arg11[%c0_16, %c0_17], %41 {strides = array<i32>} : memref<8x128xf32, #tpu.memory_space<vmem>>, vector<8x128xf32>,
    %c0_18 = arith.constant 0 : index
    %c0_19 = arith.constant 0 : index
    %43 = vector.load %arg7[%c0_18, %c0_19] : memref<128x128xf32, #tpu.memory_space<vmem>>, vector<128x128xf32>
    %cst_20 = arith.constant dense<0.000000e+00> : vector<8x128xf32>
    %44 = tpu.matmul %41, %43, %cst_20 {dimension_numbers = #tpu.dot_dimension_numbers<[1], [0], [0], [1], [0, 0, 1, 1], [], []>} : vector<8x128xf32>, vector<128x128xf32>, vector<8x128xf32> -> vector<8x128xf32>
    %c0_21 = arith.constant 0 : index
    %c0_22 = arith.constant 0 : index
    %45 = vector.load %arg8[%c0_21, %c0_22] : memref<1x128xf32, #tpu.memory_space<vmem>>, vector<1x128xf32>
    %46 = vector.broadcast %45 : vector<1x128xf32> to vector<8x128xf32>
    %47 = arith.addf %44, %46 : vector<8x128xf32>
    %c0_23 = arith.constant 0 : index
    %c0_24 = arith.constant 0 : index
    %c0_25 = arith.constant 0 : index
    %48 = vector.load %arg10[%c0_23, %c0_24, %c0_25] : memref<1x8x128xf32, #tpu.memory_space<vmem>>, vector<1x8x128xf32>
    %49 = vector.shape_cast %48 : vector<1x8x128xf32> to vector<8x128xf32>
    %50 = vector.shape_cast %47 : vector<8x128xf32> to vector<1x8x128xf32>
    tpu.vector_store %arg10[%c0_23, %c0_24, %c0_25], %50 {strides = array<i32>} : memref<1x8x128xf32, #tpu.memory_space<vmem>>, vector<1x8x128xf32>,
    %cst_26 = arith.constant dense<0xFF800000> : vector<8xf32>
    %51 = vector.multi_reduction <maximumf>, %47, %cst_26 [1] : vector<8x128xf32> to vector<8xf32>
    %52 = vector.shape_cast %51 : vector<8xf32> to vector<8x1xf32>
    %53 = vector.broadcast %52 : vector<8x1xf32> to vector<8x128xf32>
    %54 = arith.cmpf oeq, %47, %53 : vector<8x128xf32>
    %c128_i32 = arith.constant 128 : i32
    %55 = vector.broadcast %c128_i32 : i32 to vector<8x128xi32>
    %56 = arith.select %54, %0, %55 : vector<8x128xi1>, vector<8x128xi32>
    %cst_27 = arith.constant dense<2147483647> : vector<8xi32>
    %57 = vector.multi_reduction <minsi>, %56, %cst_27 [1] : vector<8x128xi32> to vector<8xi32>
    %58 = vector.shape_cast %57 : vector<8xi32> to vector<8x1xi32>
    %59 = vector.broadcast %58 : vector<8x1xi32> to vector<8x128xi32>
    %60 = arith.cmpi eq, %0, %59 : vector<8x128xi32>
    %61 = arith.extui %60 : vector<8x128xi1> to vector<8x128xi32>
    %62 = arith.sitofp %61 : vector<8x128xi32> to vector<8x128xf32>
    %63 = arith.index_cast %arg0 : i32 to index
    %64 = memref.load %arg1[%63] : memref<8xi32, #tpu.memory_space<smem>>
    %c0_i32_28 = arith.constant 0 : i32
    %65 = arith.cmpi ne, %64, %c0_i32_28 : i32
    %66 = arith.extui %65 : i1 to i32
    %c0_i32_29 = arith.constant 0 : i32
    %67 = arith.cmpi ne, %66, %c0_i32_29 : i32
    scf.if %67 {
      %c0_32 = arith.constant 0 : index
      %c0_33 = arith.constant 0 : index
      %c0_34 = arith.constant 0 : index
      %71 = vector.load %arg9[%c0_32, %c0_33, %c0_34] : memref<1x8x128xf32, #tpu.memory_space<vmem>>, vector<1x8x128xf32>
      %72 = vector.shape_cast %71 : vector<1x8x128xf32> to vector<8x128xf32>
      %c0_35 = arith.constant 0 : index
      %c0_36 = arith.constant 0 : index
      %73 = vector.load %arg12[%c0_35, %c0_36] : memref<8x128xf32, #tpu.memory_space<vmem>>, vector<8x128xf32>
      tpu.vector_store %arg12[%c0_35, %c0_36], %72 {strides = array<i32>} : memref<8x128xf32, #tpu.memory_space<vmem>>, vector<8x128xf32>,
    } else {
    }
    %c0_i32_30 = arith.constant 0 : i32
    %68 = arith.cmpi eq, %64, %c0_i32_30 : i32
    %69 = arith.extui %68 : i1 to i32
    %c0_i32_31 = arith.constant 0 : i32
    %70 = arith.cmpi ne, %69, %c0_i32_31 : i32
    scf.if %70 {
      %c0_32 = arith.constant 0 : index
      %c0_33 = arith.constant 0 : index
      %71 = vector.load %arg12[%c0_32, %c0_33] : memref<8x128xf32, #tpu.memory_space<vmem>>, vector<8x128xf32>
      tpu.vector_store %arg12[%c0_32, %c0_33], %62 {strides = array<i32>} : memref<8x128xf32, #tpu.memory_space<vmem>>, vector<8x128xf32>,
    } else {
    }
    return
  }
  func.func @transform_0(%arg0: i32, %arg1: memref<8xi32, #tpu.memory_space<smem>>) -> (i32, i32) {
    %c0_i32 = arith.constant 0 : i32
    %c0_i32_0 = arith.constant 0 : i32
    %c0_i32_1 = arith.constant 0 : i32
    return %c0_i32, %c0_i32_0 : i32, i32
  }
  func.func @transform_1(%arg0: i32, %arg1: memref<8xi32, #tpu.memory_space<smem>>) -> (i32, i32) {
    %c0_i32 = arith.constant 0 : i32
    %c0_i32_0 = arith.constant 0 : i32
    %c0_i32_1 = arith.constant 0 : i32
    return %c0_i32, %c0_i32_0 : i32, i32
  }
  func.func @transform_2(%arg0: i32, %arg1: memref<8xi32, #tpu.memory_space<smem>>) -> (i32, i32) {
    %c0_i32 = arith.constant 0 : i32
    %c0_i32_0 = arith.constant 0 : i32
    %c0_i32_1 = arith.constant 0 : i32
    return %c0_i32, %c0_i32_0 : i32, i32
  }
  func.func @transform_3(%arg0: i32, %arg1: memref<8xi32, #tpu.memory_space<smem>>) -> (i32, i32) {
    %c0_i32 = arith.constant 0 : i32
    %c0_i32_0 = arith.constant 0 : i32
    %c0_i32_1 = arith.constant 0 : i32
    return %c0_i32, %c0_i32_0 : i32, i32
  }
  func.func @transform_4(%arg0: i32, %arg1: memref<8xi32, #tpu.memory_space<smem>>) -> (i32, i32) {
    %c0_i32 = arith.constant 0 : i32
    %c0_i32_0 = arith.constant 0 : i32
    %c0_i32_1 = arith.constant 0 : i32
    return %c0_i32, %c0_i32_0 : i32, i32
  }
  func.func @transform_5(%arg0: i32, %arg1: memref<8xi32, #tpu.memory_space<smem>>) -> (i32, i32) {
    %c0_i32 = arith.constant 0 : i32
    %c0_i32_0 = arith.constant 0 : i32
    %c0_i32_1 = arith.constant 0 : i32
    return %c0_i32, %c0_i32_0 : i32, i32
  }
  func.func @transform_6(%arg0: i32, %arg1: memref<8xi32, #tpu.memory_space<smem>>) -> (i32, i32) {
    %c0_i32 = arith.constant 0 : i32
    %c0_i32_0 = arith.constant 0 : i32
    %c0_i32_1 = arith.constant 0 : i32
    return %c0_i32, %c0_i32_0 : i32, i32
  }
  func.func @transform_7(%arg0: i32, %arg1: memref<8xi32, #tpu.memory_space<smem>>) -> (i32, i32, i32) {
    %c0_i32 = arith.constant 0 : i32
    %c0_i32_0 = arith.constant 0 : i32
    %c0_i32_1 = arith.constant 0 : i32
    return %arg0, %c0_i32, %c0_i32_0 : i32, i32, i32
  }
  func.func @transform_8(%arg0: i32, %arg1: memref<8xi32, #tpu.memory_space<smem>>) -> (i32, i32, i32) {
    %c0_i32 = arith.constant 0 : i32
    %c0_i32_0 = arith.constant 0 : i32
    %c0_i32_1 = arith.constant 0 : i32
    return %arg0, %c0_i32, %c0_i32_0 : i32, i32, i32
  }
}

</mosaic_0001>

<bundles_post_ra>
// kernel: seq2seq_forward.3
= control target key start
LH: loop header
LB: loop body
LE: loop exit
PB: predicated region body
PF: predicated region fallthrough
CT: control target
= control target key end

     0   :  { %s1776_s0 = inlined_call_operand.vmem [shape: s32[8], index: 0, kind: input, shape index: {}]   ;;  %s1777_s1 = inlined_call_operand.vmem [shape: f32[8,128], index: 1, kind: input, shape index: {}]   ;;  %s1778_s2 = inlined_call_operand.vmem [shape: f32[128,384], index: 2, kind: input, shape index: {}]   ;;  %s1779_s3 = inlined_call_operand.vmem [shape: f32[128,384], index: 3, kind: input, shape index: {}]   ;;  %s1780_s4 = inlined_call_operand.vmem [shape: f32[1,384], index: 4, kind: input, shape index: {}]   ;;  %s1781_s5 = inlined_call_operand.vmem [shape: f32[1,384], index: 5, kind: input, shape index: {}]   ;;  %s1782_s6 = inlined_call_operand.vmem [shape: f32[128,128], index: 6, kind: input, shape index: {}]   ;;  %s1783_s7 = inlined_call_operand.vmem [shape: f32[1,128], index: 7, kind: input, shape index: {}]   ;;  %s1784_s8 = inlined_call_operand.vmem [shape: f32[8,8,128], index: 8, kind: input, shape index: {}]   ;;  %s1785_s9 = inlined_call_operand.vmem [shape: f32[8,8,128], index: 9, kind: output, shape index: {}]  }
   0x1   :  { %s14_s11 = sshll.u32 %s1776_s0, 4  ;;  %s15_s11 = int_to_ptr.vmem [resolvable:$true] %s14_s11 }
   0x2   :  { %s1274_s12 = scalar_lea.vmem %s15_s11, 16  ;;  %p1279_p1 = scmp.lt.s32.totalorder %s15_s11, %s15_s11 }
   0x3   :  { %p1275_p0 = scmp.ne.s32.totalorder %s15_s11, %s1274_s12  ;;  %p1280_p2 = scmp.lt.s32.totalorder %s1274_s12, %s1274_s12 }
   0x5   :  { %p1281_p3 = por %p1280_p2, %p1279_p1 }
   0x7   :  { %p1282_p4 = pnand %p1281_p3, %p1275_p0 }
   0x9   :  { %1285 = shalt.err (!%p1282_p4)  }
   0xa   :  { %s1296_s13 = smov [#allocation5]  }
   0xb   :  { %17 = dma.vmem_to_smem %s15_s11, 16, %s1296_s13, [#allocation4] }
   0xc   :  { %1290 = dma.done.wait [#allocation4], 16 }
   0xd   :  { %1291 = vsyncadd [#allocation4], 4294967280 }
   0xe   :  { %19 = sfence }
   0xf   :  { %s1354_s14 = smov 0  }
  0x10 LB: > { %s1360_s0 = sadd.s32 4294967295, %s1294_s14   ;;  %p940_p5 = scmp.ge.s32.totalorder %s1294_s14, 1  ;;  %s1294_s14 = sphi %s1354_s14, %s25_s14  }
  0x11   : > { %p268_p6 = scmp.lt.s32.totalorder %s1294_s14, 9 }
  0x13   : > { %p269_p7 = pnand %p940_p5, %p268_p6 }
  0x14   : > { %p300_p8 = scmp.lt.s32.totalorder (!%p269_p7), %s1360_s0, 7  ;;  %v308_v0 = vlaneseq (!%p269_p7)  ;;  %p943_p9 = scmp.ne.s32.totalorder (!%p269_p7), %s1360_s0, 0 }
  0x15   : > { %272 = sbr.rel (%p269_p7) target bundleno = 1025 (0x401), region = 52 }
  0x16   : > { %v1367_v1 = vand.u32 (!%p269_p7), 127, %v308_v0 }
  0x1c   : > { %s301_s15 = scalar_select %p300_p8, %s1360_s0, 7 }
  0x1d   : > { %313 = sbr.rel (%p943_p9) target bundleno = 36 (0x24), region = 56  ;;  %v314_v2 = vld [vmem:[%s1777_s1] sm:$0xff] (!%p943_p9)  ;;  %vm316_vm0 = vcmp.eq.s32.totalorder (!%p943_p9), %v1367_v1, 1  ;;  %v1297_v3 = vmov (!%p943_p9), 0.0  }
  0x1e   : > { %s941_s16 = sshll.u32 %s301_s15, 3  ;;  %315 = vst [vmem:[#allocation2] sm:$0xff] (!%p943_p9), %v314_v2  ;;  %v944_v4 = vsel (!%p943_p9), %vm316_vm0, 1.0, %v1297_v3 }
  0x1f   : > { %s1372_s19 = scalar_lea.vmem %s1784_s8, %s941_s16  ;;  %s1377_s22 = scalar_lea.vmem %s1785_s9, %s941_s16  ;;  %319 = vst [vmem:[#allocation3] sm:$0xff] (!%p943_p9), %v944_v4 }
  0x24 PF: > { %v323_v5 = vld [vmem:[%s1778_s2 + $0x8] sm:$0xff]  ;;  %v326_v6 = vld [vmem:[%s1778_s2 + $0x20] sm:$0xff]  ;;  %v325_v9 = vld [vmem:[%s1778_s2 + $0x18] sm:$0xff]  ;;  %v1298_v12 = vmov 0.0|0.0   ;;  %v1299_v13 = vmov 0.0   ;;  %vm1300_vm1 = vmmov 0  }
  0x25   : > { %v322_v7 = vld [vmem:[%s1778_s2] sm:$0xff]  ;;  %v1109_v8 = vpack.c.bf16 %v326_v6, %v323_v5  ;;  %v329_v10 = vld [vmem:[%s1778_s2 + $0x38] sm:$0xff]  ;;  %v332_v11 = vld [vmem:[%s1778_s2 + $0x50] sm:$0xff]  ;;  %1141 = vmatprep.subr.bf16.mxu1 %v1298_v12  ;;  %451 = vmatprep.mubr.f32.mxu0 %v1299_v13  ;;  %s871_s20 = sld [smem:[#allocation5 + %s1360_s0]] }
  0x26   : > { %v1111_v14 = vpack.c.bf16 %v325_v9, %v322_v7  ;;  %v1113_v15 = vpack.c.bf16 %v332_v11, %v329_v10  ;;  %v328_v16 = vld [vmem:[%s1778_s2 + $0x30] sm:$0xff]  ;;  %v331_v17 = vld [vmem:[%s1778_s2 + $0x48] sm:$0xff]  ;;  %1036 = vmatprep.mubr.msk.f32.mxu1 %vm1300_vm1, %v1299_v13  ;;  %v338_v19 = vld [vmem:[%s1778_s2 + $0x80] sm:$0xff] }
  0x27   : > { %v335_v18 = vld [vmem:[%s1778_s2 + $0x68] sm:$0xff]  ;;  %1110 = vmatprep.subr.bf16.mxu0 %v1109_v8  ;;  %v1115_v20 = vpack.c.bf16 %v331_v17, %v328_v16  ;;  %v334_v22 = vld [vmem:[%s1778_s2 + $0x60] sm:$0xff]  ;;  %v337_v23 = vld [vmem:[%s1778_s2 + $0x78] sm:$0xff] }
  0x28   : > { %1112 = vmatpush1.bf16.msra.mxu0 %v1111_v14  ;;  %v1117_v21 = vpack.c.bf16 %v338_v19, %v335_v18  ;;  %v341_v24 = vld [vmem:[%s1778_s2 + $0x98] sm:$0xff]  ;;  %v344_v25 = vld [vmem:[%s1778_s2 + $0xb0] sm:$0xff]  ;;  %v1119_v26 = vpack.c.bf16 %v337_v23, %v334_v22  ;;  %v343_v29 = vld [vmem:[%s1778_s2 + $0xa8] sm:$0xff] }
  0x29   : > { %1114 = vmatprep.subr.bf16.mxu0 %v1113_v15  ;;  %v340_v27 = vld [vmem:[%s1778_s2 + $0x90] sm:$0xff]  ;;  %v1121_v28 = vpack.c.bf16 %v344_v25, %v341_v24  ;;  %v327_v31 = vld [vmem:[%s1778_s2 + $0x28] sm:$0xff]  ;;  %v350_v33 = vld [vmem:[%s1778_s2 + $0xe0] sm:$0xff] }
  0x2a   : > { %v324_v30 = vld [vmem:[%s1778_s2 + $0x10] sm:$0xff]  ;;  %v347_v32 = vld [vmem:[%s1778_s2 + $0xc8] sm:$0xff]  ;;  %v330_v35 = vld [vmem:[%s1778_s2 + $0x40] sm:$0xff]  ;;  %v1123_v37 = vpack.c.bf16 %v343_v29, %v340_v27 }
  0x2b   : > { %v1142_v34 = vpack.c.bf16 %v327_v31, %v324_v30  ;;  %v333_v36 = vld [vmem:[%s1778_s2 + $0x58] sm:$0xff]  ;;  %v1125_v39 = vpack.c.bf16 %v350_v33, %v347_v32  ;;  %v346_v40 = vld [vmem:[%s1778_s2 + $0xc0] sm:$0xff]  ;;  %v336_v42 = vld [vmem:[%s1778_s2 + $0x70] sm:$0xff]  ;;  %p949_p10 = scmp.eq.s32.totalorder %s871_s20, 0 }
  0x2c   : > { %1116 = vmatpush1.bf16.msra.mxu0 %v1115_v20  ;;  %v1145_v38 = vpack.c.bf16 %v333_v36, %v330_v35  ;;  %v349_v41 = vld [vmem:[%s1778_s2 + $0xd8] sm:$0xff]  ;;  %v356_v44 = vld [vmem:[%s1778_s2 + $0x110] sm:$0xff]  ;;  %v339_v45 = vld [vmem:[%s1778_s2 + $0x88] sm:$0xff] }
  0x2d   : > { %1118 = vmatprep.subr.bf16.mxu0 %v1117_v21  ;;  %1143 = vmatpush3.bf16.msra.mxu1 %v1142_v34  ;;  %v353_v43 = vld [vmem:[%s1778_s2 + $0xf8] sm:$0xff]  ;;  %v1127_v46 = vpack.c.bf16 %v349_v41, %v346_v40  ;;  %v352_v47 = vld [vmem:[%s1778_s2 + $0xf0] sm:$0xff]  ;;  %v1148_v48 = vpack.c.bf16 %v339_v45, %v336_v42  ;;  %v355_v50 = vld [vmem:[%s1778_s2 + $0x108] sm:$0xff] }
  0x2e   : > { %1144 = vmatprep.subr.bf16.mxu1 %v1298_v12  ;;  %v1129_v49 = vpack.c.bf16 %v356_v44, %v353_v43  ;;  %v342_v51 = vld [vmem:[%s1778_s2 + $0xa0] sm:$0xff]  ;;  %v345_v52 = vld [vmem:[%s1778_s2 + $0xb8] sm:$0xff]  ;;  %v359_v53 = vld [vmem:[%s1778_s2 + $0x128] sm:$0xff]  ;;  %v1131_v55 = vpack.c.bf16 %v355_v50, %v352_v47 }
  0x2f   : > { %v362_v54 = vld [vmem:[%s1778_s2 + $0x140] sm:$0xff]  ;;  %v1151_v57 = vpack.c.bf16 %v345_v52, %v342_v51  ;;  %v361_v59 = vld [vmem:[%s1778_s2 + $0x138] sm:$0xff]  ;;  %v348_v60 = vld [vmem:[%s1778_s2 + $0xd0] sm:$0xff] }
  0x30   : > { %1120 = vmatpush1.bf16.msra.mxu0 %v1119_v26  ;;  %v358_v56 = vld [vmem:[%s1778_s2 + $0x120] sm:$0xff]  ;;  %v1133_v58 = vpack.c.bf16 %v362_v54, %v359_v53  ;;  %v351_v61 = vld [vmem:[%s1778_s2 + $0xe8] sm:$0xff]  ;;  %v365_v62 = vld [vmem:[%s1778_s2 + $0x158] sm:$0xff] }
  0x31   : > { %1122 = vmatprep.subr.bf16.mxu0 %v1121_v28  ;;  %1146 = vmatpush3.bf16.msra.mxu1 %v1145_v38  ;;  %v368_v63 = vld [vmem:[%s1778_s2 + $0x170] sm:$0xff]  ;;  %v1135_v2 = vpack.c.bf16 %v361_v59, %v358_v56  ;;  %v1154_v4 = vpack.c.bf16 %v351_v61, %v348_v60  ;;  %v367_v6 = vld [vmem:[%s1778_s2 + $0x168] sm:$0xff]  ;;  %v354_v7 = vld [vmem:[%s1778_s2 + $0x100] sm:$0xff] }
  0x32   : > { %1147 = vmatprep.subr.bf16.mxu1 %v1298_v12  ;;  %v364_v3 = vld [vmem:[%s1778_s2 + $0x150] sm:$0xff]  ;;  %v1137_v5 = vpack.c.bf16 %v368_v63, %v365_v62  ;;  %v357_v8 = vld [vmem:[%s1778_s2 + $0x118] sm:$0xff]  ;;  %v529_v9 = vld [vmem:[%s1779_s3 + $0x8] sm:$0xff] }
  0x33   : > { %v532_v10 = vld [vmem:[%s1779_s3 + $0x20] sm:$0xff]  ;;  %v1139_v11 = vpack.c.bf16 %v367_v6, %v364_v3  ;;  %v1157_v15 = vpack.c.bf16 %v357_v8, %v354_v7  ;;  %v531_v17 = vld [vmem:[%s1779_s3 + $0x18] sm:$0xff]  ;;  %v360_v18 = vld [vmem:[%s1778_s2 + $0x130] sm:$0xff] }
  0x34   : > { %1124 = vmatpush1.bf16.msra.mxu0 %v1123_v37  ;;  %v528_v14 = vld [vmem:[%s1779_s3] sm:$0xff]  ;;  %v1165_v16 = vpack.c.bf16 %v532_v10, %v529_v9  ;;  %v363_v19 = vld [vmem:[%s1778_s2 + $0x148] sm:$0xff]  ;;  %v535_v20 = vld [vmem:[%s1779_s3 + $0x38] sm:$0xff] }
  0x35   : > { %1126 = vmatprep.subr.bf16.mxu0 %v1125_v39  ;;  %1149 = vmatpush3.bf16.msra.mxu1 %v1148_v48  ;;  %v538_v21 = vld [vmem:[%s1779_s3 + $0x50] sm:$0xff]  ;;  %v321_v22 = vld [vmem:[#allocation3] sm:$0xff]  ;;  %v1167_v23 = vpack.c.bf16 %v531_v17, %v528_v14  ;;  %v1160_v25 = vpack.c.bf16 %v363_v19, %v360_v18  ;;  %v366_v28 = vld [vmem:[%s1778_s2 + $0x160] sm:$0xff] }
  0x36   : > { %1150 = vmatprep.subr.bf16.mxu1 %v1298_v12  ;;  %v534_v24 = vld [vmem:[%s1779_s3 + $0x30] sm:$0xff]  ;;  %v1169_v26 = vpack.c.bf16 %v538_v21, %v535_v20  ;;  %v537_v27 = vld [vmem:[%s1779_s3 + $0x48] sm:$0xff]  ;;  %v369_v29 = vld [vmem:[%s1778_s2 + $0x178] sm:$0xff] }
  0x37   : > { %v541_v30 = vld [vmem:[%s1779_s3 + $0x68] sm:$0xff]  ;;  %v544_v31 = vld [vmem:[%s1779_s3 + $0x80] sm:$0xff]  ;;  %v1171_v32 = vpack.c.bf16 %v537_v27, %v534_v24  ;;  %v1163_v34 = vpack.c.bf16 %v369_v29, %v366_v28  ;;  %v543_v36 = vld [vmem:[%s1779_s3 + $0x78] sm:$0xff] }
  0x38   : > { %1128 = vmatpush1.bf16.msra.mxu0 %v1127_v46  ;;  %v540_v33 = vld [vmem:[%s1779_s3 + $0x60] sm:$0xff]  ;;  %v1173_v35 = vpack.c.bf16 %v544_v31, %v541_v30  ;;  %v530_v37 = vld [vmem:[%s1779_s3 + $0x10] sm:$0xff]  ;;  %v533_v38 = vld [vmem:[%s1779_s3 + $0x28] sm:$0xff] }
  0x39   : > { %1130 = vmatprep.subr.bf16.mxu0 %v1129_v49  ;;  %1152 = vmatpush3.bf16.msra.mxu1 %v1151_v57  ;;  %v547_v39 = vld [vmem:[%s1779_s3 + $0x98] sm:$0xff]  ;;  %v550_v40 = vld [vmem:[%s1779_s3 + $0xb0] sm:$0xff]  ;;  %v1175_v41 = vpack.c.bf16 %v543_v36, %v540_v33  ;;  %v1198_v43 = vpack.c.bf16 %v533_v38, %v530_v37  ;;  %v549_v45 = vld [vmem:[%s1779_s3 + $0xa8] sm:$0xff] }
  0x3a   : > { %1153 = vmatprep.subr.bf16.mxu1 %v1298_v12  ;;  %v546_v42 = vld [vmem:[%s1779_s3 + $0x90] sm:$0xff]  ;;  %v1177_v44 = vpack.c.bf16 %v550_v40, %v547_v39  ;;  %v536_v46 = vld [vmem:[%s1779_s3 + $0x40] sm:$0xff]  ;;  %v539_v47 = vld [vmem:[%s1779_s3 + $0x58] sm:$0xff] }
  0x3b   : > { %v553_v48 = vld [vmem:[%s1779_s3 + $0xc8] sm:$0xff]  ;;  %v556_v49 = vld [vmem:[%s1779_s3 + $0xe0] sm:$0xff]  ;;  %v1179_v50 = vpack.c.bf16 %v549_v45, %v546_v42  ;;  %v1201_v52 = vpack.c.bf16 %v539_v47, %v536_v46  ;;  %v555_v54 = vld [vmem:[%s1779_s3 + $0xd8] sm:$0xff] }
  0x3c   : > { %1132 = vmatpush1.bf16.msra.mxu0 %v1131_v55  ;;  %v552_v51 = vld [vmem:[%s1779_s3 + $0xc0] sm:$0xff]  ;;  %v1181_v53 = vpack.c.bf16 %v556_v49, %v553_v48  ;;  %v542_v55 = vld [vmem:[%s1779_s3 + $0x70] sm:$0xff]  ;;  %v545_v56 = vld [vmem:[%s1779_s3 + $0x88] sm:$0xff] }
  0x3d   : > { %1134 = vmatprep.subr.bf16.mxu0 %v1133_v58  ;;  %1155 = vmatpush3.bf16.msra.mxu1 %v1154_v4  ;;  %v559_v57 = vld [vmem:[%s1779_s3 + $0xf8] sm:$0xff]  ;;  %v562_v58 = vld [vmem:[%s1779_s3 + $0x110] sm:$0xff]  ;;  %v1183_v59 = vpack.c.bf16 %v555_v54, %v552_v51  ;;  %v1204_v61 = vpack.c.bf16 %v545_v56, %v542_v55  ;;  %v561_v63 = vld [vmem:[%s1779_s3 + $0x108] sm:$0xff] }
  0x3e   : > { %1156 = vmatprep.subr.bf16.mxu1 %v1298_v12  ;;  %v558_v60 = vld [vmem:[%s1779_s3 + $0xf0] sm:$0xff]  ;;  %v1185_v62 = vpack.c.bf16 %v562_v58, %v559_v57  ;;  %v551_v3 = vld [vmem:[%s1779_s3 + $0xb8] sm:$0xff]  ;;  %v565_v4 = vld [vmem:[%s1779_s3 + $0x128] sm:$0xff] }
  0x3f   : > { %v1187_v6 = vpack.c.bf16 %v561_v63, %v558_v60  ;;  %v564_v7 = vld [vmem:[%s1779_s3 + $0x120] sm:$0xff]  ;;  %v567_v10 = vld [vmem:[%s1779_s3 + $0x138] sm:$0xff]  ;;  %v557_v14 = vld [vmem:[%s1779_s3 + $0xe8] sm:$0xff] }
  0x40   : > { %1136 = vmatpush1.bf16.msra.mxu0 %v1135_v2  ;;  %v548_v2 = vld [vmem:[%s1779_s3 + $0xa0] sm:$0xff]  ;;  %v1191_v17 = vpack.c.bf16 %v567_v10, %v564_v7  ;;  %v570_v18 = vld [vmem:[%s1779_s3 + $0x150] sm:$0xff]  ;;  %v573_v21 = vld [vmem:[%s1779_s3 + $0x168] sm:$0xff] }
  0x41   : > { %1138 = vmatprep.subr.bf16.mxu0 %v1137_v5  ;;  %1158 = vmatpush3.bf16.msra.mxu1 %v1157_v15  ;;  %v568_v5 = vld [vmem:[%s1779_s3 + $0x140] sm:$0xff]  ;;  %v1207_v8 = vpack.c.bf16 %v551_v3, %v548_v2  ;;  %v571_v15 = vld [vmem:[%s1779_s3 + $0x158] sm:$0xff]  ;;  %v1195_v24 = vpack.c.bf16 %v573_v21, %v570_v18  ;;  %v569_v27 = vld [vmem:[%s1779_s3 + $0x148] sm:$0xff] }
  0x42   : > { %1159 = vmatprep.subr.bf16.mxu1 %v1298_v12  ;;  %v1189_v9 = vpack.c.bf16 %v568_v5, %v565_v4  ;;  %v1686_v28 = vld [vmem:[#allocation2] sm:$0xff]  ;;  %v575_v31 = vld [vmem:[%s1779_s3 + $0x178] sm:$0xff]  ;;  %v758_v36 = vld [vmem:[%s1782_s6 + $0x10] sm:$0xff] }
  0x43   : > { %v572_v30 = vld [vmem:[%s1779_s3 + $0x160] sm:$0xff]  ;;  %v759_v37 = vld [vmem:[%s1782_s6 + $0x18] sm:$0xff]  ;;  %v761_v40 = vld [vmem:[%s1782_s6 + $0x28] sm:$0xff] }
  0x44   : > { %1140 = vmatpush1.bf16.msra.mxu0 %v1139_v11  ;;  %v554_v11 = vld [vmem:[%s1779_s3 + $0xd0] sm:$0xff]  ;;  %v756_v33 = vld [vmem:[%s1782_s6] sm:$0xff]  ;;  %v1225_v38 = vpack.c.bf16 %v759_v37, %v758_v36  ;;  %v765_v46 = vld [vmem:[%s1782_s6 + $0x48] sm:$0xff] }
  0x45   : > { %1166 = vmatprep.subr.bf16.mxu0 %v1165_v16  ;;  %1161 = vmatpush3.bf16.msra.mxu1 %v1160_v25  ;;  %v574_v16 = vld [vmem:[%s1779_s3 + $0x170] sm:$0xff]  ;;  %v1210_v19 = vpack.c.bf16 %v557_v14, %v554_v11  ;;  %v760_v39 = vld [vmem:[%s1782_s6 + $0x20] sm:$0xff]  ;;  %v767_v49 = vld [vmem:[%s1782_s6 + $0x58] sm:$0xff] }
  0x46   : > { %1162 = vmatprep.subr.bf16.mxu1 %v1298_v12  ;;  %v1193_v20 = vpack.c.bf16 %v574_v16, %v571_v15  ;;  %v762_v42 = vld [vmem:[%s1782_s6 + $0x30] sm:$0xff]  ;;  %v764_v45 = vld [vmem:[%s1782_s6 + $0x40] sm:$0xff]  ;;  %v771_v55 = vld [vmem:[%s1782_s6 + $0x78] sm:$0xff] }
  0x47   : > { %452 = vmatmul.mubr.f32.vlgmr.msra.gmra.mrb[0].mxu0 %v321_v22  ;;  %v1234_v47 = vpack.c.bf16 %v765_v46, %v764_v45  ;;  %v766_v48 = vld [vmem:[%s1782_s6 + $0x50] sm:$0xff]  ;;  %v768_v51 = vld [vmem:[%s1782_s6 + $0x60] sm:$0xff] }
  0x48   : > { %1168 = vmatpush1.bf16.msra.mxu0 %v1167_v23  ;;  %657 = vmatprep.mubr.f32.mxu0 %v1299_v13  ;;  %v563_v23 = vld [vmem:[%s1779_s3 + $0x118] sm:$0xff]  ;;  %v770_v54 = vld [vmem:[%s1782_s6 + $0x70] sm:$0xff] }
  0x49   : > { %1170 = vmatprep.subr.bf16.mxu0 %v1169_v26  ;;  %1164 = vmatpush3.bf16.msra.mxu1 %v1163_v34  ;;  %v566_v26 = vld [vmem:[%s1779_s3 + $0x130] sm:$0xff]  ;;  %v757_v34 = vld [vmem:[%s1782_s6 + $0x8] sm:$0xff]  ;;  %v1243_v56 = vpack.c.bf16 %v771_v55, %v770_v54 }
  0x4a   : > { %1197 = vmatprep.subr.bf16.mxu1 %v1298_v12  ;;  %v1216_v29 = vpack.c.bf16 %v569_v27, %v566_v26 }
  0x4c   : > { %1172 = vmatpush1.bf16.msra.mxu0 %v1171_v32  ;;  %1037 = vmatmul.mubr.f32.vlgmr.msra.gmra.mrb[0].mxu1 %v321_v22  ;;  %v560_v22 = vld [vmem:[%s1779_s3 + $0x100] sm:$0xff]  ;;  %v1219_v32 = vpack.c.bf16 %v575_v31, %v572_v30 }
  0x4d   : > { %1174 = vmatprep.subr.bf16.mxu0 %v1173_v35  ;;  %1199 = vmatpush3.bf16.msra.mxu1 %v1198_v43  ;;  %v1213_v25 = vpack.c.bf16 %v563_v23, %v560_v22  ;;  %v1222_v35 = vpack.c.bf16 %v757_v34, %v756_v33  ;;  %v763_v43 = vld [vmem:[%s1782_s6 + $0x38] sm:$0xff] }
  0x4e   : > { %1200 = vmatprep.subr.bf16.mxu1 %v1298_v12  ;;  %1071 = vmatprep.mubr.msk.f32.mxu1 %vm1300_vm1, %v1299_v13 }
  0x50   : > { %1176 = vmatpush1.bf16.msra.mxu0 %v1175_v41  ;;  %v1228_v41 = vpack.c.bf16 %v761_v40, %v760_v39 }
  0x51   : > { %1178 = vmatprep.subr.bf16.mxu0 %v1177_v44  ;;  %1202 = vmatpush3.bf16.msra.mxu1 %v1201_v52  ;;  %v1231_v44 = vpack.c.bf16 %v763_v43, %v762_v42  ;;  %v769_v52 = vld [vmem:[%s1782_s6 + $0x68] sm:$0xff] }
  0x52   : > { %1203 = vmatprep.subr.bf16.mxu1 %v1298_v12 }
  0x54   : > { %1180 = vmatpush1.bf16.msra.mxu0 %v1179_v50  ;;  %v1237_v50 = vpack.c.bf16 %v767_v49, %v766_v48 }
  0x55   : > { %1182 = vmatprep.subr.bf16.mxu0 %v1181_v53  ;;  %1205 = vmatpush3.bf16.msra.mxu1 %v1204_v61  ;;  %v1240_v53 = vpack.c.bf16 %v769_v52, %v768_v51  ;;  %v576_v61 = vld [vmem:[%s1781_s5] sm:$0x7] }
  0x56   : > { %1206 = vmatprep.subr.bf16.mxu1 %v1298_v12  ;;  %v876_v52 = vld [vmem:[%s1372_s19] sm:$0xff] (!%p949_p10) }
  0x57   : > { %877 = vst [vmem:[#allocation3] sm:$0xff] (!%p949_p10), %v876_v52 }
  0x58   : > { %1184 = vmatpush1.bf16.msra.mxu0 %v1183_v59  ;;  %v373_v59 = vshrl.u32 %v308_v0, 7 }
  0x59   : > { %1186 = vmatprep.subr.bf16.mxu0 %v1185_v62  ;;  %1208 = vmatpush3.bf16.msra.mxu1 %v1207_v8  ;;  %v370_v62 = vld [vmem:[%s1780_s4] sm:$0x7] }
  0x5a   : > { %1209 = vmatprep.subr.bf16.mxu1 %v1298_v12  ;;  %v374_v60 = vsub.s32 0, %v373_v59  ;;  %v378_v63 = vsub.s32 1, %v373_v59  ;;  %v382_v18 = vsub.s32 2, %v373_v59 }
  0x5c   : > { %1188 = vmatpush1.bf16.msra.mxu0 %v1187_v6  ;;  %v375_v2 = vrot.slane %v370_v62, %v374_v60  ;;  %v581_v3 = vrot.slane %v576_v61, %v374_v60  ;;  %v379_v4 = vrot.slane %v370_v62, %v378_v63  ;;  %v585_v5 = vrot.slane %v576_v61, %v378_v63 }
  0x5d   : > { %1190 = vmatprep.subr.bf16.mxu0 %v1189_v9  ;;  %1211 = vmatpush3.bf16.msra.mxu1 %v1210_v19  ;;  %v589_v19 = vrot.slane %v576_v61, %v382_v18  ;;  %v383_v21 = vrot.slane %v370_v62, %v382_v18 }
  0x5e   : > { %1212 = vmatprep.subr.bf16.mxu1 %v1298_v12  ;;  %v1247_v7 = vadd.f32 %v585_v5, %v379_v4 }
  0x60   : > { %1192 = vmatpush1.bf16.msra.mxu0 %v1191_v17 }
  0x61   : > { %1194 = vmatprep.subr.bf16.mxu0 %v1193_v20  ;;  %1214 = vmatpush3.bf16.msra.mxu1 %v1213_v25 }
  0x62   : > { %1215 = vmatprep.subr.bf16.mxu1 %v1298_v12 }
  0x64   : > { %1196 = vmatpush1.bf16.msra.mxu0 %v1195_v24 }
  0x65   : > { %1221 = vmatprep.subr.bf16.mxu0 %v1298_v12  ;;  %1217 = vmatpush3.bf16.msra.mxu1 %v1216_v29 }
  0x66   : > { %1218 = vmatprep.subr.bf16.mxu1 %v1298_v12 }
  0x67   : > { %658 = vmatmul.mubr.f32.vlgmr.msra.gmra.mrb[0].mxu0 %v1686_v28 }
  0x68   : > { %1106 = vmatprep.mubr.msk.f32.mxu0 %vm1300_vm1, %v1299_v13  ;;  %1223 = vmatpush3.bf16.msra.mxu0 %v1222_v35  ;;  %v947_v35 = vld [vmem:[%s1783_s7] ss:$0 sm:$0xff] }
  0x69   : > { %1220 = vmatpush3.bf16.msra.mxu1 %v1219_v32  ;;  %1224 = vmatprep.subr.bf16.mxu0 %v1298_v12 }
  0x6c   : > { %1072 = vmatmul.mubr.f32.vlgmr.msra.gmra.mrb[2].mxu1 %v1686_v28  ;;  %1226 = vmatpush3.bf16.msra.mxu0 %v1225_v38 }
  0x6d   : > { %1227 = vmatprep.subr.bf16.mxu0 %v1298_v12 }
  0x70   : > { %1229 = vmatpush3.bf16.msra.mxu0 %v1228_v41 }
  0x71   : > { %1230 = vmatprep.subr.bf16.mxu0 %v1298_v12 }
  0x74   : > { %1232 = vmatpush3.bf16.msra.mxu0 %v1231_v44 }
  0x75   : > { %1233 = vmatprep.subr.bf16.mxu0 %v1298_v12 }
  0x78   : > { %1235 = vmatpush3.bf16.msra.mxu0 %v1234_v47 }
  0x79   : > { %1236 = vmatprep.subr.bf16.mxu0 %v1298_v12 }
  0x7c   : > { %1238 = vmatpush3.bf16.msra.mxu0 %v1237_v50 }
  0x7d   : > { %1239 = vmatprep.subr.bf16.mxu0 %v1298_v12 }
  0x80   : > { %1241 = vmatpush3.bf16.msra.mxu0 %v1240_v53 }
  0x81   : > { %1242 = vmatprep.subr.bf16.mxu0 %v1298_v12  ;;  %v1245_v12 = vadd.f32 %v581_v3, %v375_v2 }
  0x84   : > { %1244 = vmatpush3.bf16.msra.mxu0 %v1243_v56 }
 0x11f   : > { %v524_v57 = vpop.f32.mrb[0].mxu1 }
 0x120   : > { %v1038_v58 = vpop.f32.mrb[1].mxu1  ;;  %v525_v25 = vadd.f32 %v524_v57, %v383_v21 }
 0x13a   : > { %v659_v6 = vpop.f32.mrb[0].mxu0 }
 0x13b   : > { %v1246_v8 = vadd.f32 %v1245_v12, %v659_v6  ;;  %v661_v9 = vpop.f32.mrb[1].mxu0 }
 0x13c   : > { %v1248_v10 = vadd.f32 %v1247_v7, %v661_v9 }
 0x13d   : > { %v945_v0 = vmul.f32 -1.442695, %v1246_v8 }
 0x13e   : > { %v946_v11 = vmul.f32 -1.442695, %v1248_v10 }
 0x13f   : > { %1264 = vpow2.f32 %v945_v0  ;;  %v730_v14 = vpop.f32.mrb[2].mxu1 }
 0x140   : > { %v1073_v15 = vpop.f32.mrb[3].mxu1  ;;  %1266 = vpow2.f32 %v946_v11  ;;  %v731_v23 = vadd.f32 %v730_v14, %v589_v19 }
 0x149   : > { %v1265_v16 = vpop.eup %1264 }
 0x14a   : > { %v738_v17 = vadd.f32 1.0, %v1265_v16  ;;  %v1267_v20 = vpop.eup %1266 }
 0x14b   : > { %v745_v22 = vadd.f32 1.0, %v1267_v20 }
 0x14c   : > { %1268 = vrcp.f32 %v738_v17 }
 0x14d   : > { %1270 = vrcp.f32 %v745_v22 }
 0x156   : > { %v1269_v24 = vpop.eup %1268 }
 0x157   : > { %v748_v26 = vmul.f32 %v1269_v24, %v731_v23  ;;  %v1271_v29 = vpop.eup %1270 }
 0x158   : > { %v751_v30 = vsub.f32 1.0, %v1271_v29  ;;  %v753_v33 = vmul.f32 %v1271_v29, %v1686_v28 }
 0x159   : > { %v749_v27 = vadd.f32 %v748_v26, %v525_v25 }
 0x15b   : > { %1272 = vtanh.f32 %v749_v27 }
 0x165   : > { %v1273_v31 = vpop.eup %1272 }
 0x166   : > { %v752_v32 = vmul.f32 %v1273_v31, %v751_v30 }
 0x168   : > { %v754_v34 = vadd.f32 %v753_v33, %v752_v32 }
 0x16a   : > { %755 = vst [vmem:[#allocation2] sm:$0xff] %v754_v34  ;;  %1107 = vmatmul.mubr.f32.vlgmr.msra.gmra.mrb[2].mxu0 %v754_v34 }
 0x23d   : > { %v845_v36 = vpop.f32.mrb[2].mxu0 }
 0x23e   : > { %v846_v37 = vadd.f32 %v947_v35, %v845_v36  ;;  %v1108_v38 = vpop.f32.mrb[3].mxu0 }
 0x240   : > { %849 = vst [vmem:[%s1377_s22] sm:$0xff] %v846_v37  ;;  %850 = vmax.xlane.f32.xlu0 %v846_v37 }
 0x2cd   : > { %v851_v39 = vpop.xlane.xlu0 %850 }
 0x2ce   : > { %vm852_vm2 = vcmp.eq.f32.partialorder %v846_v37, %v851_v39 }
 0x2cf   : > { %v853_v40 = vsel %vm852_vm2, %v1367_v1, 128 }
 0x2d0   : > { %v855_v41 = vshra.s32 %v853_v40, 16  ;;  %v854_v28 = vand.u32 65535, %v853_v40 }
 0x2d2   : > { %v857_v42 = vcvt.s32.f32 %v855_v41  ;;  %v856_v44 = vcvt.s32.f32 %v854_v28 }
 0x2d4   : > { %858 = vmin.xlane.f32.xlu0 %v857_v42 }
 0x361   : > { %v859_v43 = vpop.xlane.xlu0 %858 }
 0x362   : > { %vm860_vm3 = vcmp.eq.f32.partialorder %v857_v42, %v859_v43  ;;  %v865_v46 = vcvt.f32.s32 %v859_v43 }
 0x363   : > { %v861_v45 = vsel %vm860_vm3, %v856_v44, inf }
 0x364   : > { %862 = vmin.xlane.f32.xlu1 %v861_v45  ;;  %v866_v48 = vshll.u32 %v865_v46, 16 }
 0x3f1   : > { %v863_v47 = vpop.xlane.xlu1 %862  ;;  %875 = sbr.rel (%p949_p10) target bundleno = 1016 (0x3f8), region = 60 }
 0x3f2   : > { %v864_v49 = vcvt.f32.s32 %v863_v47 }
 0x3f4   : > { %v867_v50 = vadd.s32 %v866_v48, %v864_v49 }
 0x3f6   : > { %vm868_vm4 = vcmp.eq.s32.totalorder %v1367_v1, %v867_v50 }
 0x3f7   : > { %v948_v51 = vsel %vm868_vm4, 1.0, %v1299_v13 }
 0x3f8 PF: > { %p950_p11 = scmp.ne.s32.totalorder %s871_s20, 0 }
 0x3f9   : > { %882 = vst [vmem:[#allocation3] sm:$0xff] (!%p950_p11), %v948_v51 }
 0x3fa   : > { %881 = sbr.rel (%p950_p11) target bundleno = 1025 (0x401), region = 64 }
 0x401 PF: > { %s25_s14 = sadd.s32 1, %s1294_s14  }
 0x402   : > { %p22_p12 = scmp.ge.s32.totalorder %s25_s14, 10  }
 0x404   :  { %24 = sbr.rel (!%p22_p12) target bundleno = 16 (0x10), region = 94 }

// kernel: seq2seq_forward.2
= control target key start
LH: loop header
LB: loop body
LE: loop exit
PB: predicated region body
PF: predicated region fallthrough
CT: control target
= control target key end

     0   :  { %10 = vsyncpa [#allocation4], 0  ;;  %s2941_s18 = smov [#allocation3]   ;;  %s3559_s0 = inlined_call_operand.vmem [shape: f32[64,128], index: 0, kind: input, shape index: {}]   ;;  %s3560_s1 = inlined_call_operand.vmem [shape: f32[128,384], index: 1, kind: input, shape index: {}]   ;;  %s3561_s2 = inlined_call_operand.hbm [shape: f32[128,384], index: 2, kind: input, shape index: {}]   ;;  %s3562_s3 = inlined_call_operand.vmem [shape: f32[1,384], index: 3, kind: input, shape index: {}]   ;;  %s3563_s4 = inlined_call_operand.vmem [shape: f32[1,384], index: 4, kind: input, shape index: {}]   ;;  %s3564_s5 = inlined_call_operand.vmem [shape: f32[8,128], index: 5, kind: output, shape index: {}]  }
   0x1   :  { %s20_s19 = sshll.u32 %s2941_s18, 4  ;;  %s2917_s22 = scalar_lea.hbm %s3561_s2, 6144  ;;  %s21_s19 = int_to_ptr.vmem [resolvable:$true] %s20_s19 }
   0x2   :  { %p2918_p0 = scmp.ne.s32.totalorder %s3561_s2, %s2917_s22  ;;  %p2921_p1 = scmp.lt.u32.totalorder %s2917_s22, %s3561_s2 }
   0x4   :  { %p2923_p2 = pnand %p2921_p1, %p2918_p0 }
   0x6   :  { %2926 = shalt.err (!%p2923_p2)
}
   0x7   :  { %s2927_s27 = scalar_lea.vmem %s21_s19, 6144  ;;  %p2932_p4 = scmp.lt.s32.totalorder %s21_s19, %s21_s19 }
   0x8   :  { %p2928_p3 = scmp.ne.s32.totalorder %s21_s19, %s2927_s27  ;;  %p2933_p5 = scmp.lt.s32.totalorder %s2927_s27, %s2927_s27 }
   0xa   :  { %p2934_p6 = por %p2933_p5, %p2932_p4 }
   0xc   :  { %p2935_p7 = pnand %p2934_p6, %p2928_p3 }
   0xe   :  { %2938 = shalt.err (!%p2935_p7)
}
   0xf   :  { %s2942_s28 = smov 384   ;;  %s2943_s29 = smov 24  }
  0x10   :  { %26 = dma.hbm_to_vmem [thread:$0]  %s3561_s2, 6144, %s21_s19, [#allocation4], %s2942_s28, %s2942_s28, %s2943_s29  }
  0x11   :  { %2939 = dma.done.wait [#allocation4], 6144  }
  0x12   :  { %2940 = vsyncadd [#allocation4], 4294961152  ;;  %v2944_v0 = vmov 0.0   ;;  %v43_v1 = vld [vmem:[%s3560_s1 + $0x8] sm:$0xff]  ;;  %v46_v2 = vld [vmem:[%s3560_s1 + $0x20] sm:$0xff]  ;;  %vm2946_vm0 = vmmov 0  }
  0x13   :  { %171 = vmatprep.mubr.f32.mxu0 %v2944_v0  ;;  %v42_v3 = vld [vmem:[%s3560_s1] sm:$0xff]  ;;  %v2271_v4 = vpack.c.bf16 %v46_v2, %v43_v1  ;;  %v45_v5 = vld [vmem:[%s3560_s1 + $0x18] sm:$0xff]  ;;  %v52_v7 = vld [vmem:[%s3560_s1 + $0x50] sm:$0xff] }
  0x14   :  { %v49_v6 = vld [vmem:[%s3560_s1 + $0x38] sm:$0xff]  ;;  %v2273_v8 = vpack.c.bf16 %v45_v5, %v42_v3  ;;  %v48_v10 = vld [vmem:[%s3560_s1 + $0x30] sm:$0xff]  ;;  %v51_v11 = vld [vmem:[%s3560_s1 + $0x48] sm:$0xff] }
  0x15   :  { %v2275_v9 = vpack.c.bf16 %v52_v7, %v49_v6  ;;  %v55_v12 = vld [vmem:[%s3560_s1 + $0x68] sm:$0xff]  ;;  %2272 = vmatprep.subr.bf16.mxu0 %v2271_v4  ;;  %v58_v13 = vld [vmem:[%s3560_s1 + $0x80] sm:$0xff]  ;;  %v2277_v14 = vpack.c.bf16 %v51_v11, %v48_v10  ;;  %v57_v17 = vld [vmem:[%s3560_s1 + $0x78] sm:$0xff] }
  0x16   :  { %2274 = vmatpush1.bf16.msra.mxu0 %v2273_v8  ;;  %v2279_v15 = vpack.c.bf16 %v58_v13, %v55_v12  ;;  %v54_v16 = vld [vmem:[%s3560_s1 + $0x60] sm:$0xff]  ;;  %v61_v18 = vld [vmem:[%s3560_s1 + $0x98] sm:$0xff]  ;;  %v64_v19 = vld [vmem:[%s3560_s1 + $0xb0] sm:$0xff] }
  0x17   :  { %2276 = vmatprep.subr.bf16.mxu0 %v2275_v9  ;;  %v2281_v20 = vpack.c.bf16 %v57_v17, %v54_v16  ;;  %v60_v21 = vld [vmem:[%s3560_s1 + $0x90] sm:$0xff]  ;;  %v2283_v22 = vpack.c.bf16 %v64_v19, %v61_v18  ;;  %v63_v23 = vld [vmem:[%s3560_s1 + $0xa8] sm:$0xff]  ;;  %v70_v27 = vld [vmem:[%s3560_s1 + $0xe0] sm:$0xff] }
  0x18   :  { %v44_v24 = vld [vmem:[%s3560_s1 + $0x10] sm:$0xff]  ;;  %v47_v25 = vld [vmem:[%s3560_s1 + $0x28] sm:$0xff]  ;;  %v50_v29 = vld [vmem:[%s3560_s1 + $0x40] sm:$0xff]  ;;  %v2285_v31 = vpack.c.bf16 %v63_v23, %v60_v21 }
  0x19   :  { %v67_v26 = vld [vmem:[%s3560_s1 + $0xc8] sm:$0xff]  ;;  %v2303_v28 = vpack.c.bf16 %v47_v25, %v44_v24  ;;  %v53_v30 = vld [vmem:[%s3560_s1 + $0x58] sm:$0xff]  ;;  %v66_v32 = vld [vmem:[%s3560_s1 + $0xc0] sm:$0xff] }
  0x1a   :  { %2278 = vmatpush1.bf16.msra.mxu0 %v2277_v14  ;;  %v2307_v33 = vpack.c.bf16 %v53_v30, %v50_v29  ;;  %v2287_v34 = vpack.c.bf16 %v70_v27, %v67_v26  ;;  %v69_v35 = vld [vmem:[%s3560_s1 + $0xd8] sm:$0xff]  ;;  %v3065_v36 = vld [vmem:[%s3559_s0] sm:$0xff]  ;;  %v56_v37 = vld [vmem:[%s3560_s1 + $0x70] sm:$0xff] }
  0x1b   :  { %2280 = vmatprep.subr.bf16.mxu0 %v2279_v15  ;;  %2304 = vmatprep.subr.bf16.mxu1 %v2303_v28  ;;  %v73_v38 = vld [vmem:[%s3560_s1 + $0xf8] sm:$0xff]  ;;  %v76_v39 = vld [vmem:[%s3560_s1 + $0x110] sm:$0xff]  ;;  %v59_v40 = vld [vmem:[%s3560_s1 + $0x88] sm:$0xff]  ;;  %v2289_v42 = vpack.c.bf16 %v69_v35, %v66_v32 }
  0x1c   :  { %2306 = vmatpush3.bf16.msra.mxu1 %v2303_v28  ;;  %1979 = vmatprep.mubr.f32.mxu1 %v3065_v36  ;;  %v2311_v41 = vpack.c.bf16 %v59_v40, %v56_v37  ;;  %v62_v43 = vld [vmem:[%s3560_s1 + $0xa0] sm:$0xff]  ;;  %v65_v44 = vld [vmem:[%s3560_s1 + $0xb8] sm:$0xff]  ;;  %v2291_v45 = vpack.c.bf16 %v76_v39, %v73_v38  ;;  %v72_v46 = vld [vmem:[%s3560_s1 + $0xf0] sm:$0xff]  ;;  %v2945_v40 = vmov 0.0|0.0  }
  0x1d   :  { %2308 = vmatprep.subr.bf16.mxu1 %v2307_v33  ;;  %v75_v47 = vld [vmem:[%s3560_s1 + $0x108] sm:$0xff]  ;;  %v82_v49 = vld [vmem:[%s3560_s1 + $0x140] sm:$0xff]  ;;  %v2315_v50 = vpack.c.bf16 %v65_v44, %v62_v43  ;;  %v68_v51 = vld [vmem:[%s3560_s1 + $0xd0] sm:$0xff] }
  0x1e   :  { %2282 = vmatpush1.bf16.msra.mxu0 %v2281_v20  ;;  %v79_v48 = vld [vmem:[%s3560_s1 + $0x128] sm:$0xff]  ;;  %v2293_v53 = vpack.c.bf16 %v75_v47, %v72_v46  ;;  %v78_v55 = vld [vmem:[%s3560_s1 + $0x120] sm:$0xff]  ;;  %v81_v56 = vld [vmem:[%s3560_s1 + $0x138] sm:$0xff] }
  0x1f   :  { %2284 = vmatprep.subr.bf16.mxu0 %v2283_v22  ;;  %v71_v52 = vld [vmem:[%s3560_s1 + $0xe8] sm:$0xff]  ;;  %v2295_v54 = vpack.c.bf16 %v82_v49, %v79_v48  ;;  %v85_v57 = vld [vmem:[%s3560_s1 + $0x158] sm:$0xff]  ;;  %v88_v58 = vld [vmem:[%s3560_s1 + $0x170] sm:$0xff]  ;;  %v2297_v62 = vpack.c.bf16 %v81_v56, %v78_v55 }
  0x20   :  { %2310 = vmatpush3.bf16.msra.mxu1 %v2307_v33  ;;  %v2319_v59 = vpack.c.bf16 %v71_v52, %v68_v51  ;;  %v74_v60 = vld [vmem:[%s3560_s1 + $0x100] sm:$0xff]  ;;  %v77_v61 = vld [vmem:[%s3560_s1 + $0x118] sm:$0xff]  ;;  %v2299_v63 = vpack.c.bf16 %v88_v58, %v85_v57  ;;  %v84_v1 = vld [vmem:[%s3560_s1 + $0x150] sm:$0xff] }
  0x21   :  { %2312 = vmatprep.subr.bf16.mxu1 %v2311_v41  ;;  %v87_v2 = vld [vmem:[%s3560_s1 + $0x168] sm:$0xff]  ;;  %v353_v4 = vld [vmem:[#allocation3 + $0x20] sm:$0xff]  ;;  %v2323_v5 = vpack.c.bf16 %v77_v61, %v74_v60  ;;  %v80_v6 = vld [vmem:[%s3560_s1 + $0x130] sm:$0xff] }
  0x22   :  { %2286 = vmatpush1.bf16.msra.mxu0 %v2285_v31  ;;  %v350_v3 = vld [vmem:[#allocation3 + $0x8] sm:$0xff]  ;;  %v2301_v8 = vpack.c.bf16 %v87_v2, %v84_v1  ;;  %v349_v10 = vld [vmem:[#allocation3] sm:$0xff]  ;;  %v352_v11 = vld [vmem:[#allocation3 + $0x18] sm:$0xff] }
  0x23   :  { %2288 = vmatprep.subr.bf16.mxu0 %v2287_v34  ;;  %v83_v7 = vld [vmem:[%s3560_s1 + $0x148] sm:$0xff]  ;;  %v3134_v9 = vpack.c.bf16 %v353_v4, %v350_v3  ;;  %v356_v12 = vld [vmem:[#allocation3 + $0x38] sm:$0xff]  ;;  %v359_v13 = vld [vmem:[#allocation3 + $0x50] sm:$0xff]  ;;  %v3142_v17 = vpack.c.bf16 %v352_v11, %v349_v10 }
  0x24   :  { %2314 = vmatpush3.bf16.msra.mxu1 %v2311_v41  ;;  %v2327_v14 = vpack.c.bf16 %v83_v7, %v80_v6  ;;  %v86_v15 = vld [vmem:[%s3560_s1 + $0x160] sm:$0xff]  ;;  %v89_v16 = vld [vmem:[%s3560_s1 + $0x178] sm:$0xff]  ;;  %v3145_v18 = vpack.c.bf16 %v359_v13, %v356_v12  ;;  %v355_v19 = vld [vmem:[#allocation3 + $0x30] sm:$0xff] }
  0x25   :  { %2316 = vmatprep.subr.bf16.mxu1 %v2315_v50  ;;  %v358_v20 = vld [vmem:[#allocation3 + $0x48] sm:$0xff]  ;;  %v365_v22 = vld [vmem:[#allocation3 + $0x80] sm:$0xff]  ;;  %v2331_v23 = vpack.c.bf16 %v89_v16, %v86_v15  ;;  %v364_v28 = vld [vmem:[#allocation3 + $0x78] sm:$0xff] }
  0x26   :  { %2290 = vmatpush1.bf16.msra.mxu0 %v2289_v42  ;;  %v362_v21 = vld [vmem:[#allocation3 + $0x68] sm:$0xff]  ;;  %v3153_v25 = vpack.c.bf16 %v358_v20, %v355_v19  ;;  %v361_v27 = vld [vmem:[#allocation3 + $0x60] sm:$0xff]  ;;  %v368_v29 = vld [vmem:[#allocation3 + $0x98] sm:$0xff] }
  0x27   :  { %2292 = vmatprep.subr.bf16.mxu0 %v2291_v45  ;;  %v35_v24 = vld [vmem:[%s3559_s0 + $0x8] sm:$0xff]  ;;  %v3156_v26 = vpack.c.bf16 %v365_v22, %v362_v21  ;;  %v371_v30 = vld [vmem:[#allocation3 + $0xb0] sm:$0xff]  ;;  %v3163_v34 = vpack.c.bf16 %v364_v28, %v361_v27  ;;  %v377_v39 = vld [vmem:[#allocation3 + $0xe0] sm:$0xff] }
  0x28   :  { %2318 = vmatpush3.bf16.msra.mxu1 %v2315_v50  ;;  %v351_v31 = vld [vmem:[#allocation3 + $0x10] sm:$0xff]  ;;  %v354_v32 = vld [vmem:[#allocation3 + $0x28] sm:$0xff]  ;;  %v3166_v35 = vpack.c.bf16 %v371_v30, %v368_v29  ;;  %v357_v42 = vld [vmem:[#allocation3 + $0x40] sm:$0xff] }
  0x29   :  { %2320 = vmatprep.subr.bf16.mxu1 %v2319_v59  ;;  %v36_v33 = vld [vmem:[%s3559_s0 + $0x10] sm:$0xff]  ;;  %v370_v37 = vld [vmem:[#allocation3 + $0xa8] sm:$0xff]  ;;  %v3169_v41 = vpack.c.bf16 %v354_v32, %v351_v31  ;;  %v360_v43 = vld [vmem:[#allocation3 + $0x58] sm:$0xff] }
  0x2a   :  { %2294 = vmatpush1.bf16.msra.mxu0 %v2293_v53  ;;  %v374_v38 = vld [vmem:[#allocation3 + $0xc8] sm:$0xff]  ;;  %v37_v44 = vld [vmem:[%s3559_s0 + $0x18] sm:$0xff]  ;;  %v373_v47 = vld [vmem:[#allocation3 + $0xc0] sm:$0xff]  ;;  %v3182_v51 = vpack.c.bf16 %v360_v43, %v357_v42 }
  0x2b   :  { %2296 = vmatprep.subr.bf16.mxu0 %v2295_v54  ;;  %v3179_v46 = vpack.c.bf16 %v377_v39, %v374_v38  ;;  %v376_v48 = vld [vmem:[#allocation3 + $0xd8] sm:$0xff]  ;;  %v383_v50 = vld [vmem:[#allocation3 + $0x110] sm:$0xff]  ;;  %v366_v53 = vld [vmem:[#allocation3 + $0x88] sm:$0xff] }
  0x2c   :  { %2322 = vmatpush3.bf16.msra.mxu1 %v2319_v59  ;;  %v380_v49 = vld [vmem:[#allocation3 + $0xf8] sm:$0xff]  ;;  %v363_v52 = vld [vmem:[#allocation3 + $0x70] sm:$0xff]  ;;  %v38_v54 = vld [vmem:[%s3559_s0 + $0x20] sm:$0xff]  ;;  %v3190_v55 = vpack.c.bf16 %v376_v48, %v373_v47 }
  0x2d   :  { %2324 = vmatprep.subr.bf16.mxu1 %v2323_v5  ;;  %v3193_v56 = vpack.c.bf16 %v383_v50, %v380_v49  ;;  %v379_v57 = vld [vmem:[#allocation3 + $0xf0] sm:$0xff]  ;;  %v382_v58 = vld [vmem:[#allocation3 + $0x108] sm:$0xff]  ;;  %v389_v60 = vld [vmem:[#allocation3 + $0x140] sm:$0xff]  ;;  %v3196_v61 = vpack.c.bf16 %v366_v53, %v363_v52 }
  0x2e   :  { %2298 = vmatpush1.bf16.msra.mxu0 %v2297_v62  ;;  %v386_v59 = vld [vmem:[#allocation3 + $0x128] sm:$0xff]  ;;  %v369_v62 = vld [vmem:[#allocation3 + $0xa0] sm:$0xff]  ;;  %v3204_v2 = vpack.c.bf16 %v382_v58, %v379_v57  ;;  %v40_v3 = vld [vmem:[%s3559_s0 + $0x30] sm:$0xff] }
  0x2f   :  { %2300 = vmatprep.subr.bf16.mxu0 %v2299_v63  ;;  %v372_v63 = vld [vmem:[#allocation3 + $0xb8] sm:$0xff]  ;;  %v39_v1 = vld [vmem:[%s3559_s0 + $0x28] sm:$0xff]  ;;  %v3210_v4 = vpack.c.bf16 %v389_v60, %v386_v59  ;;  %v375_v11 = vld [vmem:[#allocation3 + $0xd0] sm:$0xff] }
  0x30   :  { %2326 = vmatpush3.bf16.msra.mxu1 %v2323_v5  ;;  %v385_v5 = vld [vmem:[#allocation3 + $0x120] sm:$0xff]  ;;  %v388_v6 = vld [vmem:[#allocation3 + $0x138] sm:$0xff]  ;;  %v3213_v10 = vpack.c.bf16 %v372_v63, %v369_v62  ;;  %v378_v12 = vld [vmem:[#allocation3 + $0xe8] sm:$0xff] }
  0x31   :  { %2328 = vmatprep.subr.bf16.mxu1 %v2327_v14  ;;  %v392_v7 = vld [vmem:[#allocation3 + $0x158] sm:$0xff]  ;;  %v3218_v13 = vpack.c.bf16 %v388_v6, %v385_v5  ;;  %v391_v16 = vld [vmem:[#allocation3 + $0x150] sm:$0xff]  ;;  %v394_v19 = vld [vmem:[#allocation3 + $0x168] sm:$0xff]  ;;  %v3227_v20 = vpack.c.bf16 %v378_v12, %v375_v11 }
  0x32   :  { %2302 = vmatpush1.bf16.msra.mxu0 %v2301_v8  ;;  %v395_v8 = vld [vmem:[#allocation3 + $0x170] sm:$0xff]  ;;  %v381_v21 = vld [vmem:[#allocation3 + $0x100] sm:$0xff]  ;;  %v384_v22 = vld [vmem:[#allocation3 + $0x118] sm:$0xff] }
  0x33   :  { %2336 = vmatprep.subr.bf16.mxu0 %v3134_v9  ;;  %v3224_v15 = vpack.c.bf16 %v395_v8, %v392_v7  ;;  %v387_v27 = vld [vmem:[#allocation3 + $0x130] sm:$0xff]  ;;  %v390_v28 = vld [vmem:[#allocation3 + $0x148] sm:$0xff]  ;;  %v393_v30 = vld [vmem:[#allocation3 + $0x160] sm:$0xff] }
  0x34   :  { %2330 = vmatpush3.bf16.msra.mxu1 %v2327_v14  ;;  %v41_v14 = vld [vmem:[%s3559_s0 + $0x38] sm:$0xff]  ;;  %v3245_v29 = vpack.c.bf16 %v390_v28, %v387_v27  ;;  %v90_v38 = vld [vmem:[%s3562_s3] sm:$0x7] }
  0x35   :  { %172 = vmatmul.mubr.f32.vlgmr.msra.gmra.mrb[0].mxu0 %v3065_v36  ;;  %2332 = vmatprep.subr.bf16.mxu1 %v2331_v23  ;;  %v367_v36 = vld [vmem:[#allocation3 + $0x90] sm:$0xff]  ;;  %v396_v31 = vld [vmem:[#allocation3 + $0x178] sm:$0xff]  ;;  %v397_v59 = vld [vmem:[%s3563_s4] sm:$0x7] }
  0x36   :  { %2338 = vmatpush1.bf16.msra.mxu0 %v3142_v17  ;;  %177 = vmatprep.mubr.f32.mxu0 %v2944_v0  ;;  %v3176_v45 = vpack.c.bf16 %v370_v37, %v367_v36  ;;  %v3253_v32 = vpack.c.bf16 %v396_v31, %v393_v30 }
  0x37   :  { %2340 = vmatprep.subr.bf16.mxu0 %v3145_v18 }
  0x38   :  { %2334 = vmatpush3.bf16.msra.mxu1 %v2331_v23  ;;  %v3234_v23 = vpack.c.bf16 %v394_v19, %v391_v16 }
  0x39   :  { %178 = vmatmul.mubr.f32.gmra.mrb[2].mxu0 %v35_v24  ;;  %2367 = vmatprep.subr.bf16.mxu1 %v2945_v40 }
  0x3a   :  { %2342 = vmatpush1.bf16.msra.mxu0 %v3153_v25  ;;  %183 = vmatprep.mubr.f32.mxu0 %v2944_v0 }
  0x3b   :  { %2344 = vmatprep.subr.bf16.mxu0 %v3156_v26  ;;  %1980 = vmatmul.mubr.f32.vlgmr.msra.gmra.mrb[0].mxu1 %v35_v24  ;;  %v3238_v24 = vpack.c.bf16 %v384_v22, %v381_v21 }
  0x3c   :  { %2369 = vmatpush3.bf16.msra.mxu1 %v3169_v41  ;;  %1982 = vmatprep.mubr.f32.mxu1 %v36_v33 }
  0x3d   :  { %184 = vmatmul.mubr.f32.gmra.mrb[4].mxu0 %v36_v33  ;;  %2370 = vmatprep.subr.bf16.mxu1 %v2945_v40  ;;  %v92_v33 = vlaneseq }
  0x3e   :  { %2346 = vmatpush1.bf16.msra.mxu0 %v3163_v34  ;;  %189 = vmatprep.mubr.f32.mxu0 %v2944_v0 }
  0x3f   :  { %2348 = vmatprep.subr.bf16.mxu0 %v3166_v35  ;;  %1983 = vmatmul.mubr.f32.gmra.mrb[2].mxu1 %v37_v44  ;;  %v93_v36 = vshrl.u32 %v92_v33, 7 }
  0x40   :  { %2372 = vmatpush3.bf16.msra.mxu1 %v3182_v51  ;;  %1985 = vmatprep.mubr.f32.mxu1 %v38_v54 }
  0x41   :  { %190 = vmatmul.mubr.f32.gmra.mrb[6].mxu0 %v37_v44  ;;  %2373 = vmatprep.subr.bf16.mxu1 %v2945_v40  ;;  %v102_v37 = vsub.s32 2, %v93_v36  ;;  %v94_v58 = vsub.s32 0, %v93_v36 }
  0x42   :  { %2350 = vmatpush1.bf16.msra.mxu0 %v3176_v45  ;;  %195 = vmatprep.mubr.f32.mxu0 %v2944_v0 }
  0x43   :  { %2352 = vmatprep.subr.bf16.mxu0 %v3179_v46  ;;  %1986 = vmatmul.mubr.f32.gmra.mrb[4].mxu1 %v39_v1  ;;  %v103_v39 = vrot.slane %v90_v38, %v102_v37  ;;  %v95_v5 = vrot.slane %v90_v38, %v94_v58  ;;  %v408_v6 = vrot.slane %v397_v59, %v94_v58 }
  0x44   :  { %2375 = vmatpush3.bf16.msra.mxu1 %v3196_v61  ;;  %1988 = vmatprep.mubr.f32.mxu1 %v40_v3 }
  0x45   :  { %196 = vmatmul.mubr.f32.gmra.mrb[8].mxu0 %v38_v54  ;;  %2376 = vmatprep.subr.bf16.mxu1 %v2945_v40  ;;  %v3311_v11 = vadd.f32 %v408_v6, %v95_v5 }
  0x46   :  { %2354 = vmatpush1.bf16.msra.mxu0 %v3190_v55  ;;  %201 = vmatprep.mubr.f32.mxu0 %v2944_v0 }
  0x47   :  { %2356 = vmatprep.subr.bf16.mxu0 %v3193_v56  ;;  %1989 = vmatmul.mubr.f32.gmra.mrb[6].mxu1 %v41_v14 }
  0x48   :  { %2378 = vmatpush3.bf16.msra.mxu1 %v3213_v10  ;;  %2023 = vmatprep.mubr.msk.f32.mxu1 %vm2946_vm0, %v2944_v0 }
  0x49   :  { %202 = vmatmul.mubr.f32.gmra.mrb[10].mxu0 %v39_v1  ;;  %2379 = vmatprep.subr.bf16.mxu1 %v2945_v40  ;;  %v98_v1 = vsub.s32 1, %v93_v36  ;;  %v3317_v36 = vrot.slane %v397_v59, %v102_v37 }
  0x4a   :  { %2358 = vmatpush1.bf16.msra.mxu0 %v3204_v2  ;;  %207 = vmatprep.mubr.f32.mxu0 %v2944_v0 }
  0x4b   :  { %2360 = vmatprep.subr.bf16.mxu0 %v3210_v4  ;;  %v99_v7 = vrot.slane %v90_v38, %v98_v1  ;;  %v412_v8 = vrot.slane %v397_v59, %v98_v1 }
  0x4c   :  { %2381 = vmatpush3.bf16.msra.mxu1 %v3227_v20 }
  0x4d   :  { %208 = vmatmul.mubr.f32.gmra.mrb[12].mxu0 %v40_v3  ;;  %2382 = vmatprep.subr.bf16.mxu1 %v2945_v40 }
  0x4e   :  { %2362 = vmatpush1.bf16.msra.mxu0 %v3218_v13  ;;  %213 = vmatprep.mubr.f32.mxu0 %v2944_v0 }
  0x4f   :  { %2364 = vmatprep.subr.bf16.mxu0 %v3224_v15 }
  0x50   :  { %2384 = vmatpush3.bf16.msra.mxu1 %v3238_v24 }
  0x51   :  { %214 = vmatmul.mubr.f32.gmra.mrb[14].mxu0 %v41_v14  ;;  %2385 = vmatprep.subr.bf16.mxu1 %v2945_v40  ;;  %v3313_v14 = vadd.f32 %v412_v8, %v99_v7 }
  0x52   :  { %2366 = vmatpush1.bf16.msra.mxu0 %v3234_v23  ;;  %484 = vmatprep.mubr.f32.mxu0 %v2944_v0 }
  0x53   :  { %2392 = vmatprep.subr.bf16.mxu0 %v3134_v9 }
  0x54   :  { %2387 = vmatpush3.bf16.msra.mxu1 %v3245_v29 }
  0x55   :  { %485 = vmatmul.mubr.f32.vlgmr.msra.gmra.mrb[0].mxu0 %v2944_v0  ;;  %2388 = vmatprep.subr.bf16.mxu1 %v2945_v40 }
  0x56   :  { %2394 = vmatpush1.bf16.msra.mxu0 %v3142_v17  ;;  %652 = vmatprep.mubr.f32.mxu0 %v2944_v0 }
  0x57   :  { %2396 = vmatprep.subr.bf16.mxu0 %v3145_v18 }
  0x58   :  { %2390 = vmatpush3.bf16.msra.mxu1 %v3253_v32 }
  0x59   :  { %2423 = vmatprep.subr.bf16.mxu1 %v2945_v40 }
  0x5a   :  { %2398 = vmatpush1.bf16.msra.mxu0 %v3153_v25 }
  0x5b   :  { %2400 = vmatprep.subr.bf16.mxu0 %v3156_v26  ;;  %2024 = vmatmul.mubr.f32.vlgmr.msra.gmra.mrb[8].mxu1 %v2944_v0 }
  0x5c   :  { %2425 = vmatpush3.bf16.msra.mxu1 %v3169_v41  ;;  %2058 = vmatprep.mubr.msk.f32.mxu1 %vm2946_vm0, %v2944_v0 }
  0x5d   :  { %2426 = vmatprep.subr.bf16.mxu1 %v2945_v40 }
  0x5e   :  { %2402 = vmatpush1.bf16.msra.mxu0 %v3163_v34 }
  0x5f   :  { %2404 = vmatprep.subr.bf16.mxu0 %v3166_v35 }
  0x60   :  { %2428 = vmatpush3.bf16.msra.mxu1 %v3182_v51 }
  0x61   :  { %2429 = vmatprep.subr.bf16.mxu1 %v2945_v40 }
  0x62   :  { %2406 = vmatpush1.bf16.msra.mxu0 %v3176_v45 }
  0x63   :  { %2408 = vmatprep.subr.bf16.mxu0 %v3179_v46 }
  0x64   :  { %2431 = vmatpush3.bf16.msra.mxu1 %v3196_v61 }
  0x65   :  { %2432 = vmatprep.subr.bf16.mxu1 %v2945_v40 }
  0x66   :  { %2410 = vmatpush1.bf16.msra.mxu0 %v3190_v55 }
  0x67   :  { %2412 = vmatprep.subr.bf16.mxu0 %v3193_v56 }
  0x68   :  { %2434 = vmatpush3.bf16.msra.mxu1 %v3213_v10 }
  0x69   :  { %2435 = vmatprep.subr.bf16.mxu1 %v2945_v40 }
  0x6a   :  { %2414 = vmatpush1.bf16.msra.mxu0 %v3204_v2 }
  0x6b   :  { %2416 = vmatprep.subr.bf16.mxu0 %v3210_v4 }
  0x6c   :  { %2437 = vmatpush3.bf16.msra.mxu1 %v3227_v20 }
  0x6d   :  { %2438 = vmatprep.subr.bf16.mxu1 %v2945_v40 }
  0x6e   :  { %2418 = vmatpush1.bf16.msra.mxu0 %v3218_v13 }
  0x6f   :  { %2420 = vmatprep.subr.bf16.mxu0 %v3224_v15 }
  0x70   :  { %2440 = vmatpush3.bf16.msra.mxu1 %v3238_v24 }
  0x71   :  { %2441 = vmatprep.subr.bf16.mxu1 %v2945_v40 }
  0x72   :  { %2422 = vmatpush1.bf16.msra.mxu0 %v3234_v23 }
  0x73   :  { %2448 = vmatprep.subr.bf16.mxu0 %v3134_v9 }
  0x74   :  { %2443 = vmatpush3.bf16.msra.mxu1 %v3245_v29 }
  0x75   :  { %2444 = vmatprep.subr.bf16.mxu1 %v2945_v40 }
  0x78   :  { %2446 = vmatpush3.bf16.msra.mxu1 %v3253_v32 }
  0x79   :  { %2479 = vmatprep.subr.bf16.mxu1 %v2945_v40 }
 0x10e   :  { %v1981_v42 = vpop.f32.mrb[0].mxu1 }
 0x10f   :  { %v3294_v43 = vadd.f32 %v1981_v42, %v103_v39  ;;  %v286_v44 = vpop.f32.mrb[1].mxu1 }
 0x112   :  { %v1984_v47 = vpop.f32.mrb[2].mxu1 }
 0x113   :  { %v3296_v48 = vadd.f32 %v1984_v47, %v103_v39  ;;  %v296_v49 = vpop.f32.mrb[3].mxu1 }
 0x114   :  { %v3298_v50 = vadd.f32 %v296_v49, %v103_v39 }
 0x116   :  { %v1987_v52 = vpop.f32.mrb[4].mxu1 }
 0x117   :  { %v3300_v53 = vadd.f32 %v1987_v52, %v103_v39  ;;  %v306_v54 = vpop.f32.mrb[5].mxu1  ;;  %v287_v52 = vadd.f32 %v286_v44, %v103_v39 }
 0x118   :  { %v3302_v57 = vadd.f32 %v306_v54, %v103_v39 }
 0x11a   :  { %v1990_v60 = vpop.f32.mrb[6].mxu1 }
 0x11b   :  { %v3307_v62 = vadd.f32 %v1990_v60, %v103_v39  ;;  %v316_v63 = vpop.f32.mrb[7].mxu1 }
 0x11c   :  { %v3309_v3 = vadd.f32 %v316_v63, %v103_v39 }
 0x128   :  { %v486_v12 = vpop.f32.mrb[0].mxu0 }
 0x129   :  { %v2784_v16 = vadd.f32 %v3311_v11, %v486_v12  ;;  %v488_v19 = vpop.f32.mrb[1].mxu0 }
 0x12a   :  { %v2786_v22 = vadd.f32 %v3313_v14, %v488_v19 }
 0x12b   :  { %v1771_v21 = vmul.f32 -1.442695, %v2784_v16 }
 0x12c   :  { %v1772_v27 = vmul.f32 -1.442695, %v2786_v22 }
 0x12d   :  { %2837 = vpow2.f32 %v1771_v21 }
 0x12e   :  { %v557_v28 = vpop.f32.mrb[8].mxu1  ;;  %2839 = vpow2.f32 %v1772_v27 }
 0x12f   :  { %v2025_v30 = vpop.f32.mrb[9].mxu1  ;;  %v558_v47 = vadd.f32 %v557_v28, %v3317_v36 }
 0x137   :  { %v2838_v31 = vpop.eup %2837 }
 0x138   :  { %v565_v33 = vadd.f32 1.0, %v2838_v31  ;;  %v2840_v38 = vpop.eup %2839 }
 0x139   :  { %v572_v42 = vadd.f32 1.0, %v2840_v38 }
 0x13a   :  { %2841 = vrcp.f32 %v565_v33 }
 0x13b   :  { %2843 = vrcp.f32 %v572_v42 }
 0x144   :  { %v2842_v49 = vpop.eup %2841 }
 0x145   :  { %v575_v54 = vmul.f32 %v2842_v49, %v558_v47  ;;  %v2844_v60 = vpop.eup %2843 }
 0x146   :  { %v578_v63 = vsub.f32 1.0, %v2844_v60  ;;  %v580_v6 = vmul.f32 0.0, %v2844_v60 }
 0x147   :  { %v576_v58 = vadd.f32 %v575_v54, %v287_v52 }
 0x149   :  { %2845 = vtanh.f32 %v576_v58 }
 0x153   :  { %v2846_v1 = vpop.eup %2845 }
 0x154   :  { %v579_v5 = vmul.f32 %v2846_v1, %v578_v63 }
 0x156   :  { %v581_v7 = vadd.f32 %v580_v6, %v579_v5 }
 0x158   :  { %653 = vmatmul.mubr.f32.vlgmr.msra.gmra.mrb[2].mxu0 %v581_v7  ;;  %2059 = vmatmul.mubr.f32.vlgmr.msra.gmra.mrb[10].mxu1 %v581_v7 }
 0x159   :  { %2450 = vmatpush1.bf16.msra.mxu0 %v3142_v17  ;;  %2481 = vmatpush3.bf16.msra.mxu1 %v3169_v41 }
 0x15a   :  { %2452 = vmatprep.subr.bf16.mxu0 %v3145_v18  ;;  %2482 = vmatprep.subr.bf16.mxu1 %v2945_v40 }
 0x15b   :  { %820 = vmatprep.mubr.f32.mxu0 %v2944_v0  ;;  %2093 = vmatprep.mubr.msk.f32.mxu1 %vm2946_vm0, %v2944_v0 }
 0x15d   :  { %2454 = vmatpush1.bf16.msra.mxu0 %v3153_v25  ;;  %2484 = vmatpush3.bf16.msra.mxu1 %v3182_v51 }
 0x15e   :  { %2456 = vmatprep.subr.bf16.mxu0 %v3156_v26  ;;  %2485 = vmatprep.subr.bf16.mxu1 %v2945_v40 }
 0x161   :  { %2458 = vmatpush1.bf16.msra.mxu0 %v3163_v34  ;;  %2487 = vmatpush3.bf16.msra.mxu1 %v3196_v61 }
 0x162   :  { %2460 = vmatprep.subr.bf16.mxu0 %v3166_v35  ;;  %2488 = vmatprep.subr.bf16.mxu1 %v2945_v40 }
 0x165   :  { %2462 = vmatpush1.bf16.msra.mxu0 %v3176_v45  ;;  %2490 = vmatpush3.bf16.msra.mxu1 %v3213_v10 }
 0x166   :  { %2464 = vmatprep.subr.bf16.mxu0 %v3179_v46  ;;  %2491 = vmatprep.subr.bf16.mxu1 %v2945_v40 }
 0x169   :  { %2466 = vmatpush1.bf16.msra.mxu0 %v3190_v55  ;;  %2493 = vmatpush3.bf16.msra.mxu1 %v3227_v20 }
 0x16a   :  { %2468 = vmatprep.subr.bf16.mxu0 %v3193_v56  ;;  %2494 = vmatprep.subr.bf16.mxu1 %v2945_v40 }
 0x16d   :  { %2470 = vmatpush1.bf16.msra.mxu0 %v3204_v2  ;;  %2496 = vmatpush3.bf16.msra.mxu1 %v3238_v24 }
 0x16e   :  { %2472 = vmatprep.subr.bf16.mxu0 %v3210_v4  ;;  %2497 = vmatprep.subr.bf16.mxu1 %v2945_v40 }
 0x171   :  { %2474 = vmatpush1.bf16.msra.mxu0 %v3218_v13  ;;  %2499 = vmatpush3.bf16.msra.mxu1 %v3245_v29 }
 0x172   :  { %2476 = vmatprep.subr.bf16.mxu0 %v3224_v15  ;;  %2500 = vmatprep.subr.bf16.mxu1 %v2945_v40 }
 0x175   :  { %2478 = vmatpush1.bf16.msra.mxu0 %v3234_v23  ;;  %2502 = vmatpush3.bf16.msra.mxu1 %v3253_v32 }
 0x176   :  { %2504 = vmatprep.subr.bf16.mxu0 %v3134_v9  ;;  %2535 = vmatprep.subr.bf16.mxu1 %v2945_v40 }
 0x22b   :  { %v654_v37 = vpop.f32.mrb[2].mxu0  ;;  %v725_v39 = vpop.f32.mrb[10].mxu1 }
 0x22c   :  { %v2788_v44 = vadd.f32 %v3311_v11, %v654_v37  ;;  %v656_v59 = vpop.f32.mrb[3].mxu0  ;;  %v2060_v8 = vpop.f32.mrb[11].mxu1  ;;  %v726_v30 = vadd.f32 %v725_v39, %v3317_v36 }
 0x22d   :  { %v2790_v16 = vadd.f32 %v3313_v14, %v656_v59 }
 0x22e   :  { %v1773_v12 = vmul.f32 -1.442695, %v2788_v44 }
 0x22f   :  { %v1774_v19 = vmul.f32 -1.442695, %v2790_v16 }
 0x230   :  { %2847 = vpow2.f32 %v1773_v12 }
 0x231   :  { %2849 = vpow2.f32 %v1774_v19 }
 0x23a   :  { %v2848_v21 = vpop.eup %2847 }
 0x23b   :  { %v733_v22 = vadd.f32 1.0, %v2848_v21  ;;  %v2850_v27 = vpop.eup %2849 }
 0x23c   :  { %v740_v28 = vadd.f32 1.0, %v2850_v27 }
 0x23d   :  { %2851 = vrcp.f32 %v733_v22 }
 0x23e   :  { %2853 = vrcp.f32 %v740_v28 }
 0x247   :  { %v2852_v31 = vpop.eup %2851 }
 0x248   :  { %v743_v33 = vmul.f32 %v2852_v31, %v726_v30  ;;  %v2854_v42 = vpop.eup %2853 }
 0x249   :  { %v746_v47 = vsub.f32 1.0, %v2854_v42  ;;  %v748_v54 = vmul.f32 %v2854_v42, %v581_v7 }
 0x24a   :  { %v744_v38 = vadd.f32 %v743_v33, %v3294_v43 }
 0x24c   :  { %2855 = vtanh.f32 %v744_v38 }
 0x256   :  { %v2856_v49 = vpop.eup %2855 }
 0x257   :  { %v747_v52 = vmul.f32 %v2856_v49, %v746_v47 }
 0x259   :  { %v749_v58 = vadd.f32 %v748_v54, %v747_v52 }
 0x25b   :  { %821 = vmatmul.mubr.f32.vlgmr.msra.gmra.mrb[4].mxu0 %v749_v58  ;;  %2094 = vmatmul.mubr.f32.vlgmr.msra.gmra.mrb[12].mxu1 %v749_v58 }
 0x25c   :  { %2506 = vmatpush1.bf16.msra.mxu0 %v3142_v17  ;;  %2537 = vmatpush3.bf16.msra.mxu1 %v3169_v41 }
 0x25d   :  { %2508 = vmatprep.subr.bf16.mxu0 %v3145_v18  ;;  %2538 = vmatprep.subr.bf16.mxu1 %v2945_v40 }
 0x25e   :  { %988 = vmatprep.mubr.f32.mxu0 %v2944_v0  ;;  %2128 = vmatprep.mubr.msk.f32.mxu1 %vm2946_vm0, %v2944_v0 }
 0x260   :  { %2510 = vmatpush1.bf16.msra.mxu0 %v3153_v25  ;;  %2540 = vmatpush3.bf16.msra.mxu1 %v3182_v51 }
 0x261   :  { %2512 = vmatprep.subr.bf16.mxu0 %v3156_v26  ;;  %2541 = vmatprep.subr.bf16.mxu1 %v2945_v40 }
 0x264   :  { %2514 = vmatpush1.bf16.msra.mxu0 %v3163_v34  ;;  %2543 = vmatpush3.bf16.msra.mxu1 %v3196_v61 }
 0x265   :  { %2516 = vmatprep.subr.bf16.mxu0 %v3166_v35  ;;  %2544 = vmatprep.subr.bf16.mxu1 %v2945_v40 }
 0x268   :  { %2518 = vmatpush1.bf16.msra.mxu0 %v3176_v45  ;;  %2546 = vmatpush3.bf16.msra.mxu1 %v3213_v10 }
 0x269   :  { %2520 = vmatprep.subr.bf16.mxu0 %v3179_v46  ;;  %2547 = vmatprep.subr.bf16.mxu1 %v2945_v40 }
 0x26c   :  { %2522 = vmatpush1.bf16.msra.mxu0 %v3190_v55  ;;  %2549 = vmatpush3.bf16.msra.mxu1 %v3227_v20 }
 0x26d   :  { %2524 = vmatprep.subr.bf16.mxu0 %v3193_v56  ;;  %2550 = vmatprep.subr.bf16.mxu1 %v2945_v40 }
 0x270   :  { %2526 = vmatpush1.bf16.msra.mxu0 %v3204_v2  ;;  %2552 = vmatpush3.bf16.msra.mxu1 %v3238_v24 }
 0x271   :  { %2528 = vmatprep.subr.bf16.mxu0 %v3210_v4  ;;  %2553 = vmatprep.subr.bf16.mxu1 %v2945_v40 }
 0x274   :  { %2530 = vmatpush1.bf16.msra.mxu0 %v3218_v13  ;;  %2555 = vmatpush3.bf16.msra.mxu1 %v3245_v29 }
 0x275   :  { %2532 = vmatprep.subr.bf16.mxu0 %v3224_v15  ;;  %2556 = vmatprep.subr.bf16.mxu1 %v2945_v40 }
 0x278   :  { %2534 = vmatpush1.bf16.msra.mxu0 %v3234_v23  ;;  %2558 = vmatpush3.bf16.msra.mxu1 %v3253_v32 }
 0x279   :  { %2560 = vmatprep.subr.bf16.mxu0 %v3134_v9  ;;  %2591 = vmatprep.subr.bf16.mxu1 %v2945_v40 }
 0x32e   :  { %v822_v43 = vpop.f32.mrb[4].mxu0  ;;  %v893_v60 = vpop.f32.mrb[12].mxu1 }
 0x32f   :  { %v2792_v63 = vadd.f32 %v3311_v11, %v822_v43  ;;  %v824_v1 = vpop.f32.mrb[5].mxu0  ;;  %v2095_v5 = vpop.f32.mrb[13].mxu1  ;;  %v894_v12 = vadd.f32 %v893_v60, %v3317_v36 }
 0x330   :  { %v2794_v7 = vadd.f32 %v3313_v14, %v824_v1 }
 0x331   :  { %v1775_v6 = vmul.f32 -1.442695, %v2792_v63 }
 0x332   :  { %v1776_v37 = vmul.f32 -1.442695, %v2794_v7 }
 0x333   :  { %2857 = vpow2.f32 %v1775_v6 }
 0x334   :  { %2859 = vpow2.f32 %v1776_v37 }
 0x33d   :  { %v2858_v39 = vpop.eup %2857 }
 0x33e   :  { %v901_v44 = vadd.f32 1.0, %v2858_v39  ;;  %v2860_v59 = vpop.eup %2859 }
 0x33f   :  { %v908_v8 = vadd.f32 1.0, %v2860_v59 }
 0x340   :  { %2861 = vrcp.f32 %v901_v44 }
 0x341   :  { %2863 = vrcp.f32 %v908_v8 }
 0x34a   :  { %v2862_v16 = vpop.eup %2861 }
 0x34b   :  { %v911_v19 = vmul.f32 %v2862_v16, %v894_v12  ;;  %v2864_v22 = vpop.eup %2863 }
 0x34c   :  { %v914_v27 = vsub.f32 1.0, %v2864_v22  ;;  %v916_v31 = vmul.f32 %v2864_v22, %v749_v58 }
 0x34d   :  { %v912_v21 = vadd.f32 %v911_v19, %v3298_v50 }
 0x34f   :  { %2865 = vtanh.f32 %v912_v21 }
 0x359   :  { %v2866_v28 = vpop.eup %2865 }
 0x35a   :  { %v915_v30 = vmul.f32 %v2866_v28, %v914_v27 }
 0x35c   :  { %v917_v33 = vadd.f32 %v916_v31, %v915_v30 }
 0x35e   :  { %989 = vmatmul.mubr.f32.vlgmr.msra.gmra.mrb[6].mxu0 %v917_v33  ;;  %2129 = vmatmul.mubr.f32.vlgmr.msra.gmra.mrb[14].mxu1 %v917_v33 }
 0x35f   :  { %2562 = vmatpush1.bf16.msra.mxu0 %v3142_v17  ;;  %2593 = vmatpush3.bf16.msra.mxu1 %v3169_v41 }
 0x360   :  { %2564 = vmatprep.subr.bf16.mxu0 %v3145_v18  ;;  %2594 = vmatprep.subr.bf16.mxu1 %v2945_v40 }
 0x361   :  { %1156 = vmatprep.mubr.f32.mxu0 %v2944_v0  ;;  %2163 = vmatprep.mubr.msk.f32.mxu1 %vm2946_vm0, %v2944_v0 }
 0x363   :  { %2566 = vmatpush1.bf16.msra.mxu0 %v3153_v25  ;;  %2596 = vmatpush3.bf16.msra.mxu1 %v3182_v51 }
 0x364   :  { %2568 = vmatprep.subr.bf16.mxu0 %v3156_v26  ;;  %2597 = vmatprep.subr.bf16.mxu1 %v2945_v40 }
 0x367   :  { %2570 = vmatpush1.bf16.msra.mxu0 %v3163_v34  ;;  %2599 = vmatpush3.bf16.msra.mxu1 %v3196_v61 }
 0x368   :  { %2572 = vmatprep.subr.bf16.mxu0 %v3166_v35  ;;  %2600 = vmatprep.subr.bf16.mxu1 %v2945_v40 }
 0x36b   :  { %2574 = vmatpush1.bf16.msra.mxu0 %v3176_v45  ;;  %2602 = vmatpush3.bf16.msra.mxu1 %v3213_v10 }
 0x36c   :  { %2576 = vmatprep.subr.bf16.mxu0 %v3179_v46  ;;  %2603 = vmatprep.subr.bf16.mxu1 %v2945_v40 }
 0x36f   :  { %2578 = vmatpush1.bf16.msra.mxu0 %v3190_v55  ;;  %2605 = vmatpush3.bf16.msra.mxu1 %v3227_v20 }
 0x370   :  { %2580 = vmatprep.subr.bf16.mxu0 %v3193_v56  ;;  %2606 = vmatprep.subr.bf16.mxu1 %v2945_v40 }
 0x373   :  { %2582 = vmatpush1.bf16.msra.mxu0 %v3204_v2  ;;  %2608 = vmatpush3.bf16.msra.mxu1 %v3238_v24 }
 0x374   :  { %2584 = vmatprep.subr.bf16.mxu0 %v3210_v4  ;;  %2609 = vmatprep.subr.bf16.mxu1 %v2945_v40 }
 0x377   :  { %2586 = vmatpush1.bf16.msra.mxu0 %v3218_v13  ;;  %2611 = vmatpush3.bf16.msra.mxu1 %v3245_v29 }
 0x378   :  { %2588 = vmatprep.subr.bf16.mxu0 %v3224_v15  ;;  %2612 = vmatprep.subr.bf16.mxu1 %v2945_v40 }
 0x37b   :  { %2590 = vmatpush1.bf16.msra.mxu0 %v3234_v23  ;;  %2614 = vmatpush3.bf16.msra.mxu1 %v3253_v32 }
 0x37c   :  { %2616 = vmatprep.subr.bf16.mxu0 %v3134_v9  ;;  %2647 = vmatprep.subr.bf16.mxu1 %v2945_v40 }
 0x431   :  { %v990_v50 = vpop.f32.mrb[6].mxu0  ;;  %v1061_v38 = vpop.f32.mrb[14].mxu1 }
 0x432   :  { %v2796_v42 = vadd.f32 %v3311_v11, %v990_v50  ;;  %v992_v47 = vpop.f32.mrb[7].mxu0  ;;  %v2130_v49 = vpop.f32.mrb[15].mxu1  ;;  %v1062_v5 = vadd.f32 %v1061_v38, %v3317_v36 }
 0x433   :  { %v2798_v54 = vadd.f32 %v3313_v14, %v992_v47 }
 0x434   :  { %v1777_v52 = vmul.f32 -1.442695, %v2796_v42 }
 0x435   :  { %v1778_v58 = vmul.f32 -1.442695, %v2798_v54 }
 0x436   :  { %2867 = vpow2.f32 %v1777_v52 }
 0x437   :  { %2869 = vpow2.f32 %v1778_v58 }
 0x440   :  { %v2868_v43 = vpop.eup %2867 }
 0x441   :  { %v1069_v60 = vadd.f32 1.0, %v2868_v43  ;;  %v2870_v63 = vpop.eup %2869 }
 0x442   :  { %v1076_v1 = vadd.f32 1.0, %v2870_v63 }
 0x443   :  { %2871 = vrcp.f32 %v1069_v60 }
 0x444   :  { %2873 = vrcp.f32 %v1076_v1 }
 0x44d   :  { %v2872_v6 = vpop.eup %2871 }
 0x44e   :  { %v1079_v7 = vmul.f32 %v2872_v6, %v1062_v5  ;;  %v2874_v39 = vpop.eup %2873 }
 0x44f   :  { %v1082_v44 = vsub.f32 1.0, %v2874_v39  ;;  %v1084_v12 = vmul.f32 %v2874_v39, %v917_v33 }
 0x450   :  { %v1080_v37 = vadd.f32 %v1079_v7, %v3296_v48 }
 0x452   :  { %2875 = vtanh.f32 %v1080_v37 }
 0x45c   :  { %v2876_v59 = vpop.eup %2875 }
 0x45d   :  { %v1083_v8 = vmul.f32 %v2876_v59, %v1082_v44 }
 0x45f   :  { %v1085_v16 = vadd.f32 %v1084_v12, %v1083_v8 }
 0x461   :  { %1157 = vmatmul.mubr.f32.vlgmr.msra.gmra.mrb[8].mxu0 %v1085_v16  ;;  %2164 = vmatmul.mubr.f32.vlgmr.msra.gmra.mrb[16].mxu1 %v1085_v16 }
 0x462   :  { %2618 = vmatpush1.bf16.msra.mxu0 %v3142_v17  ;;  %2649 = vmatpush3.bf16.msra.mxu1 %v3169_v41 }
 0x463   :  { %2620 = vmatprep.subr.bf16.mxu0 %v3145_v18  ;;  %2650 = vmatprep.subr.bf16.mxu1 %v2945_v40 }
 0x464   :  { %1324 = vmatprep.mubr.f32.mxu0 %v2944_v0  ;;  %2198 = vmatprep.mubr.msk.f32.mxu1 %vm2946_vm0, %v2944_v0 }
 0x466   :  { %2622 = vmatpush1.bf16.msra.mxu0 %v3153_v25  ;;  %2652 = vmatpush3.bf16.msra.mxu1 %v3182_v51 }
 0x467   :  { %2624 = vmatprep.subr.bf16.mxu0 %v3156_v26  ;;  %2653 = vmatprep.subr.bf16.mxu1 %v2945_v40 }
 0x46a   :  { %2626 = vmatpush1.bf16.msra.mxu0 %v3163_v34  ;;  %2655 = vmatpush3.bf16.msra.mxu1 %v3196_v61 }
 0x46b   :  { %2628 = vmatprep.subr.bf16.mxu0 %v3166_v35  ;;  %2656 = vmatprep.subr.bf16.mxu1 %v2945_v40 }
 0x46e   :  { %2630 = vmatpush1.bf16.msra.mxu0 %v3176_v45  ;;  %2658 = vmatpush3.bf16.msra.mxu1 %v3213_v10 }
 0x46f   :  { %2632 = vmatprep.subr.bf16.mxu0 %v3179_v46  ;;  %2659 = vmatprep.subr.bf16.mxu1 %v2945_v40 }
 0x472   :  { %2634 = vmatpush1.bf16.msra.mxu0 %v3190_v55  ;;  %2661 = vmatpush3.bf16.msra.mxu1 %v3227_v20 }
 0x473   :  { %2636 = vmatprep.subr.bf16.mxu0 %v3193_v56  ;;  %2662 = vmatprep.subr.bf16.mxu1 %v2945_v40 }
 0x476   :  { %2638 = vmatpush1.bf16.msra.mxu0 %v3204_v2  ;;  %2664 = vmatpush3.bf16.msra.mxu1 %v3238_v24 }
 0x477   :  { %2640 = vmatprep.subr.bf16.mxu0 %v3210_v4  ;;  %2665 = vmatprep.subr.bf16.mxu1 %v2945_v40 }
 0x47a   :  { %2642 = vmatpush1.bf16.msra.mxu0 %v3218_v13  ;;  %2667 = vmatpush3.bf16.msra.mxu1 %v3245_v29 }
 0x47b   :  { %2644 = vmatprep.subr.bf16.mxu0 %v3224_v15  ;;  %2668 = vmatprep.subr.bf16.mxu1 %v2945_v40 }
 0x47e   :  { %2646 = vmatpush1.bf16.msra.mxu0 %v3234_v23  ;;  %2670 = vmatpush3.bf16.msra.mxu1 %v3253_v32 }
 0x47f   :  { %2672 = vmatprep.subr.bf16.mxu0 %v3134_v9  ;;  %2703 = vmatprep.subr.bf16.mxu1 %v2945_v40 }
 0x534   :  { %v1158_v48 = vpop.f32.mrb[8].mxu0  ;;  %v1229_v19 = vpop.f32.mrb[16].mxu1 }
 0x535   :  { %v2800_v21 = vadd.f32 %v3311_v11, %v1158_v48  ;;  %v1160_v22 = vpop.f32.mrb[9].mxu0  ;;  %v2165_v27 = vpop.f32.mrb[17].mxu1  ;;  %v1230_v47 = vadd.f32 %v1229_v19, %v3317_v36 }
 0x536   :  { %v2802_v30 = vadd.f32 %v3313_v14, %v1160_v22 }
 0x537   :  { %v1779_v28 = vmul.f32 -1.442695, %v2800_v21 }
 0x538   :  { %v1780_v31 = vmul.f32 -1.442695, %v2802_v30 }
 0x539   :  { %2877 = vpow2.f32 %v1779_v28 }
 0x53a   :  { %2879 = vpow2.f32 %v1780_v31 }
 0x543   :  { %v2878_v33 = vpop.eup %2877 }
 0x544   :  { %v1237_v50 = vadd.f32 1.0, %v2878_v33  ;;  %v2880_v38 = vpop.eup %2879 }
 0x545   :  { %v1244_v42 = vadd.f32 1.0, %v2880_v38 }
 0x546   :  { %2881 = vrcp.f32 %v1237_v50 }
 0x547   :  { %2883 = vrcp.f32 %v1244_v42 }
 0x550   :  { %v2882_v49 = vpop.eup %2881 }
 0x551   :  { %v1247_v52 = vmul.f32 %v2882_v49, %v1230_v47  ;;  %v2884_v58 = vpop.eup %2883 }
 0x552   :  { %v1250_v43 = vsub.f32 1.0, %v2884_v58  ;;  %v1252_v1 = vmul.f32 %v2884_v58, %v1085_v16 }
 0x553   :  { %v1248_v54 = vadd.f32 %v1247_v52, %v3302_v57 }
 0x555   :  { %2885 = vtanh.f32 %v1248_v54 }
 0x55f   :  { %v2886_v60 = vpop.eup %2885 }
 0x560   :  { %v1251_v63 = vmul.f32 %v2886_v60, %v1250_v43 }
 0x562   :  { %v1253_v5 = vadd.f32 %v1252_v1, %v1251_v63 }
 0x564   :  { %1325 = vmatmul.mubr.f32.vlgmr.msra.gmra.mrb[10].mxu0 %v1253_v5  ;;  %2199 = vmatmul.mubr.f32.vlgmr.msra.gmra.mrb[18].mxu1 %v1253_v5 }
 0x565   :  { %2674 = vmatpush1.bf16.msra.mxu0 %v3142_v17  ;;  %2705 = vmatpush3.bf16.msra.mxu1 %v3169_v41 }
 0x566   :  { %2676 = vmatprep.subr.bf16.mxu0 %v3145_v18  ;;  %2706 = vmatprep.subr.bf16.mxu1 %v2945_v40 }
 0x567   :  { %1492 = vmatprep.mubr.f32.mxu0 %v2944_v0  ;;  %2233 = vmatprep.mubr.msk.f32.mxu1 %vm2946_vm0, %v2944_v0 }
 0x569   :  { %2678 = vmatpush1.bf16.msra.mxu0 %v3153_v25  ;;  %2708 = vmatpush3.bf16.msra.mxu1 %v3182_v51 }
 0x56a   :  { %2680 = vmatprep.subr.bf16.mxu0 %v3156_v26  ;;  %2709 = vmatprep.subr.bf16.mxu1 %v2945_v40 }
 0x56d   :  { %2682 = vmatpush1.bf16.msra.mxu0 %v3163_v34  ;;  %2711 = vmatpush3.bf16.msra.mxu1 %v3196_v61 }
 0x56e   :  { %2684 = vmatprep.subr.bf16.mxu0 %v3166_v35  ;;  %2712 = vmatprep.subr.bf16.mxu1 %v2945_v40 }
 0x571   :  { %2686 = vmatpush1.bf16.msra.mxu0 %v3176_v45  ;;  %2714 = vmatpush3.bf16.msra.mxu1 %v3213_v10 }
 0x572   :  { %2688 = vmatprep.subr.bf16.mxu0 %v3179_v46  ;;  %2715 = vmatprep.subr.bf16.mxu1 %v2945_v40 }
 0x575   :  { %2690 = vmatpush1.bf16.msra.mxu0 %v3190_v55  ;;  %2717 = vmatpush3.bf16.msra.mxu1 %v3227_v20 }
 0x576   :  { %2692 = vmatprep.subr.bf16.mxu0 %v3193_v56  ;;  %2718 = vmatprep.subr.bf16.mxu1 %v2945_v40 }
 0x579   :  { %2694 = vmatpush1.bf16.msra.mxu0 %v3204_v2  ;;  %2720 = vmatpush3.bf16.msra.mxu1 %v3238_v24 }
 0x57a   :  { %2696 = vmatprep.subr.bf16.mxu0 %v3210_v4  ;;  %2721 = vmatprep.subr.bf16.mxu1 %v2945_v40 }
 0x57d   :  { %2698 = vmatpush1.bf16.msra.mxu0 %v3218_v13  ;;  %2723 = vmatpush3.bf16.msra.mxu1 %v3245_v29 }
 0x57e   :  { %2700 = vmatprep.subr.bf16.mxu0 %v3224_v15  ;;  %2724 = vmatprep.subr.bf16.mxu1 %v2945_v40 }
 0x581   :  { %2702 = vmatpush1.bf16.msra.mxu0 %v3234_v23  ;;  %2726 = vmatpush3.bf16.msra.mxu1 %v3253_v32 }
 0x582   :  { %2728 = vmatprep.subr.bf16.mxu0 %v3134_v9  ;;  %2759 = vmatprep.subr.bf16.mxu1 %v2945_v40 }
 0x637   :  { %v1326_v57 = vpop.f32.mrb[10].mxu0  ;;  %v1397_v6 = vpop.f32.mrb[18].mxu1 }
 0x638   :  { %v2804_v7 = vadd.f32 %v3311_v11, %v1326_v57  ;;  %v1328_v37 = vpop.f32.mrb[11].mxu0  ;;  %v2200_v39 = vpop.f32.mrb[19].mxu1  ;;  %v1398_v9 = vadd.f32 %v1397_v6, %v3317_v36 }
 0x639   :  { %v2806_v59 = vadd.f32 %v3313_v14, %v1328_v37 }
 0x63a   :  { %v1781_v44 = vmul.f32 -1.442695, %v2804_v7 }
 0x63b   :  { %v1782_v8 = vmul.f32 -1.442695, %v2806_v59 }
 0x63c   :  { %2887 = vpow2.f32 %v1781_v44 }
 0x63d   :  { %2889 = vpow2.f32 %v1782_v8 }
 0x646   :  { %v2888_v12 = vpop.eup %2887 }
 0x647   :  { %v1405_v16 = vadd.f32 1.0, %v2888_v12  ;;  %v2890_v48 = vpop.eup %2889 }
 0x648   :  { %v1412_v19 = vadd.f32 1.0, %v2890_v48 }
 0x649   :  { %2891 = vrcp.f32 %v1405_v16 }
 0x64a   :  { %2893 = vrcp.f32 %v1412_v19 }
 0x653   :  { %v2892_v21 = vpop.eup %2891 }
 0x654   :  { %v1415_v22 = vmul.f32 %v2892_v21, %v1398_v9  ;;  %v2894_v28 = vpop.eup %2893 }
 0x655   :  { %v1418_v30 = vsub.f32 1.0, %v2894_v28  ;;  %v1420_v50 = vmul.f32 %v2894_v28, %v1253_v5 }
 0x656   :  { %v1416_v27 = vadd.f32 %v1415_v22, %v3300_v53 }
 0x658   :  { %2895 = vtanh.f32 %v1416_v27 }
 0x662   :  { %v2896_v31 = vpop.eup %2895 }
 0x663   :  { %v1419_v33 = vmul.f32 %v2896_v31, %v1418_v30 }
 0x665   :  { %v1421_v38 = vadd.f32 %v1420_v50, %v1419_v33 }
 0x667   :  { %1493 = vmatmul.mubr.f32.vlgmr.msra.gmra.mrb[12].mxu0 %v1421_v38  ;;  %2234 = vmatmul.mubr.f32.vlgmr.msra.gmra.mrb[20].mxu1 %v1421_v38 }
 0x668   :  { %2730 = vmatpush1.bf16.msra.mxu0 %v3142_v17  ;;  %2761 = vmatpush3.bf16.msra.mxu1 %v3169_v41 }
 0x669   :  { %2732 = vmatprep.subr.bf16.mxu0 %v3145_v18  ;;  %2762 = vmatprep.subr.bf16.mxu1 %v2945_v40 }
 0x66a   :  { %1660 = vmatprep.mubr.f32.mxu0 %v2944_v0  ;;  %2268 = vmatprep.mubr.msk.f32.mxu1 %vm2946_vm0, %v2944_v0 }
 0x66c   :  { %2734 = vmatpush1.bf16.msra.mxu0 %v3153_v25  ;;  %2764 = vmatpush3.bf16.msra.mxu1 %v3182_v51 }
 0x66d   :  { %2736 = vmatprep.subr.bf16.mxu0 %v3156_v26  ;;  %2765 = vmatprep.subr.bf16.mxu1 %v2945_v40 }
 0x670   :  { %2738 = vmatpush1.bf16.msra.mxu0 %v3163_v34  ;;  %2767 = vmatpush3.bf16.msra.mxu1 %v3196_v61 }
 0x671   :  { %2740 = vmatprep.subr.bf16.mxu0 %v3166_v35  ;;  %2768 = vmatprep.subr.bf16.mxu1 %v2945_v40 }
 0x674   :  { %2742 = vmatpush1.bf16.msra.mxu0 %v3176_v45  ;;  %2770 = vmatpush3.bf16.msra.mxu1 %v3213_v10 }
 0x675   :  { %2744 = vmatprep.subr.bf16.mxu0 %v3179_v46  ;;  %2771 = vmatprep.subr.bf16.mxu1 %v2945_v40 }
 0x678   :  { %2746 = vmatpush1.bf16.msra.mxu0 %v3190_v55  ;;  %2773 = vmatpush3.bf16.msra.mxu1 %v3227_v20 }
 0x679   :  { %2748 = vmatprep.subr.bf16.mxu0 %v3193_v56  ;;  %2774 = vmatprep.subr.bf16.mxu1 %v2945_v40 }
 0x67c   :  { %2750 = vmatpush1.bf16.msra.mxu0 %v3204_v2  ;;  %2776 = vmatpush3.bf16.msra.mxu1 %v3238_v24 }
 0x67d   :  { %2752 = vmatprep.subr.bf16.mxu0 %v3210_v4  ;;  %2777 = vmatprep.subr.bf16.mxu1 %v2945_v40 }
 0x680   :  { %2754 = vmatpush1.bf16.msra.mxu0 %v3218_v13  ;;  %2779 = vmatpush3.bf16.msra.mxu1 %v3245_v29 }
 0x681   :  { %2756 = vmatprep.subr.bf16.mxu0 %v3224_v15  ;;  %2780 = vmatprep.subr.bf16.mxu1 %v2945_v40 }
 0x684   :  { %2758 = vmatpush1.bf16.msra.mxu0 %v3234_v23  ;;  %2782 = vmatpush3.bf16.msra.mxu1 %v3253_v32 }
 0x73a   :  { %v1494_v0 = vpop.f32.mrb[12].mxu0  ;;  %v1565_v17 = vpop.f32.mrb[20].mxu1 }
 0x73b   :  { %v2808_v18 = vadd.f32 %v3311_v11, %v1494_v0  ;;  %v1496_v25 = vpop.f32.mrb[13].mxu0  ;;  %v2235_v26 = vpop.f32.mrb[21].mxu1  ;;  %v1566_v55 = vadd.f32 %v1565_v17, %v3317_v36 }
 0x73c   :  { %v2810_v35 = vadd.f32 %v3313_v14, %v1496_v25 }
 0x73d   :  { %v1783_v34 = vmul.f32 -1.442695, %v2808_v18 }
 0x73e   :  { %v1784_v41 = vmul.f32 -1.442695, %v2810_v35 }
 0x73f   :  { %2897 = vpow2.f32 %v1783_v34 }
 0x740   :  { %2899 = vpow2.f32 %v1784_v41 }
 0x749   :  { %v2898_v45 = vpop.eup %2897 }
 0x74a   :  { %v1573_v46 = vadd.f32 1.0, %v2898_v45  ;;  %v2900_v40 = vpop.eup %2899 }
 0x74b   :  { %v1580_v51 = vadd.f32 1.0, %v2900_v40 }
 0x74c   :  { %2901 = vrcp.f32 %v1573_v46 }
 0x74d   :  { %2903 = vrcp.f32 %v1580_v51 }
 0x756   :  { %v2902_v56 = vpop.eup %2901 }
 0x757   :  { %v1583_v61 = vmul.f32 %v2902_v56, %v1566_v55  ;;  %v2904_v4 = vpop.eup %2903 }
 0x758   :  { %v1586_v10 = vsub.f32 1.0, %v2904_v4  ;;  %v1588_v20 = vmul.f32 %v2904_v4, %v1421_v38 }
 0x759   :  { %v1584_v2 = vadd.f32 %v1583_v61, %v3309_v3 }
 0x75b   :  { %2905 = vtanh.f32 %v1584_v2 }
 0x765   :  { %v2906_v13 = vpop.eup %2905 }
 0x766   :  { %v1587_v15 = vmul.f32 %v2906_v13, %v1586_v10 }
 0x768   :  { %v1589_v23 = vadd.f32 %v1588_v20, %v1587_v15 }
 0x76a   :  { %1661 = vmatmul.mubr.f32.vlgmr.msra.gmra.mrb[14].mxu0 %v1589_v23  ;;  %2269 = vmatmul.mubr.f32.vlgmr.msra.gmra.mrb[22].mxu1 %v1589_v23 }
 0x83d   :  { %v1662_v24 = vpop.f32.mrb[14].mxu0  ;;  %v1733_v29 = vpop.f32.mrb[22].mxu1 }
 0x83e   :  { %v2812_v32 = vadd.f32 %v3311_v11, %v1662_v24  ;;  %v1664_v53 = vpop.f32.mrb[15].mxu0  ;;  %v2270_v42 = vpop.f32.mrb[23].mxu1  ;;  %v1734_v60 = vadd.f32 %v1733_v29, %v3317_v36 }
 0x83f   :  { %v2814_v49 = vadd.f32 %v3313_v14, %v1664_v53 }
 0x840   :  { %v1785_v47 = vmul.f32 -1.442695, %v2812_v32 }
 0x841   :  { %v1786_v3 = vmul.f32 -1.442695, %v2814_v49 }
 0x842   :  { %2907 = vpow2.f32 %v1785_v47 }
 0x843   :  { %2909 = vpow2.f32 %v1786_v3 }
 0x84c   :  { %v2908_v52 = vpop.eup %2907 }
 0x84d   :  { %v1741_v54 = vadd.f32 1.0, %v2908_v52  ;;  %v2910_v58 = vpop.eup %2909 }
 0x84e   :  { %v1748_v43 = vadd.f32 1.0, %v2910_v58 }
 0x84f   :  { %2911 = vrcp.f32 %v1741_v54 }
 0x850   :  { %2913 = vrcp.f32 %v1748_v43 }
 0x859   :  { %v2912_v63 = vpop.eup %2911 }
 0x85a   :  { %v1751_v1 = vmul.f32 %v2912_v63, %v1734_v60  ;;  %v2914_v5 = vpop.eup %2913 }
 0x85b   :  { %v1754_v57 = vsub.f32 1.0, %v2914_v5  ;;  %v1756_v7 = vmul.f32 %v2914_v5, %v1589_v23 }
 0x85c   :  { %v1752_v11 = vadd.f32 %v1751_v1, %v3307_v62 }
 0x85e   :  { %2915 = vtanh.f32 %v1752_v11 }
 0x868   :  { %v2916_v6 = vpop.eup %2915 }
 0x869   :  { %v1755_v14 = vmul.f32 %v2916_v6, %v1754_v57 }
 0x86b   :  { %v1757_v37 = vadd.f32 %v1756_v7, %v1755_v14 }
 0x86d   :  { %1758 = vst [vmem:[%s3564_s5] sm:$0xff] %v1757_v37 }
 0x86e   :  { %1763 = vsyncpa [#allocation4], 1 }

</bundles_post_ra>
